<compile_context>
chip_gen: v6e
topology: v6e:2x2x1
jax: 0.10.0
libtpu: 0.0.40
codegen_flags: <defaults>
</compile_context>

<pallas_src>
import functools
import math

import jax
import jax.numpy as jnp
from jax.experimental import pallas as pl
from jax.experimental.pallas import tpu as pltpu

F32 = jnp.float32
BF16 = jnp.bfloat16

PROJECTION_DIM = 128          # projection_dim
NUM_HEADS = 8                 # num_heads
FFN_DIM = 2 * PROJECTION_DIM  # transformer_units[0] = dim_feedforward
NUM_LAYERS = 4                # transformer_layers
LN_EPS = 1e-5                 # nn.LayerNorm default


# ----------------------------------------------------------------------------
# Fused transformer-block kernel (all layers, one pallas_call)
# ----------------------------------------------------------------------------
def _layernorm(x, gamma, beta, eps):
    mu = jnp.mean(x, axis=-1, keepdims=True)
    d = x - mu
    var = jnp.mean(d * d, axis=-1, keepdims=True)
    return d * jax.lax.rsqrt(var + eps) * gamma + beta


def _tf_block_kernel(tok_ref, msk_ref,
                     wqkv_ref, bqkv_ref,
                     wo_ref, bo_ref,
                     g1_ref, b1_ref,
                     w1_ref, bb1_ref,
                     w2_ref, bb2_ref,
                     g2_ref, b2_ref,
                     o_ref,
                     *, batch, seq, heads, eps):
    e = tok_ref.shape[-1]
    n = tok_ref.shape[0]          # rows in this batch shard (= batch * seq)
    z = heads * seq

    # Layer 0 (per batch shard): load the input tokens into the VMEM-resident
    # output block; it carries the token state across the sequential layer axis.
    @pl.when(pl.program_id(1) == 0)
    def _():
        o_ref[...] = tok_ref[...]

    x = o_ref[...]                                    # (N, E) f32 token state
    xb = x.astype(BF16)
    msk = msk_ref[...]                                # (H*S, E) 0/1 f32 head mask

    # ---------------- self-attention (all heads at once) ----------------
    # 1/sqrt(d_head) is already folded into the Q part of wqkv / bqkv.
    qkv = jnp.dot(xb, wqkv_ref[0], preferred_element_type=F32) + bqkv_ref[0]
    q = qkv[:, :e].reshape(batch, seq, e)             # (B, S, E)
    k = qkv[:, e:2 * e].reshape(batch, seq, e)
    v = qkv[:, 2 * e:].reshape(batch, seq, e)

    # Tile K/V over heads and mask to the block-diagonal head layout:
    #   kd[b, h*S + t, h'*dh + d] = K[b, t, h'*dh + d] * (h == h')
    kd = (jnp.concatenate([k] * heads, axis=1) * msk).astype(BF16)   # (B, Z, E)
    vd = (jnp.concatenate([v] * heads, axis=1) * msk).astype(BF16)   # (B, Z, E)

    s = jnp.einsum("bqe,bze->bqz", q.astype(BF16), kd,
                   preferred_element_type=F32)                       # (B, S, Z)
    m = jnp.max(s, axis=-1, keepdims=True)            # per-row max over all heads
    p = jnp.exp(s - m)                                 # valid per-head stabiliser

    num = jnp.einsum("bqz,bze->bqe", p.astype(BF16), vd,
                     preferred_element_type=F32).reshape(n, e)       # (N, E)
    den = jnp.dot(p.reshape(n, z), msk,
                  preferred_element_type=F32)          # exact per-head sums, (N, E)
    attn = num * pl.reciprocal(jnp.maximum(den, 1e-30), approx=True)
    attn = jnp.dot(attn.astype(BF16), wo_ref[0],
                   preferred_element_type=F32) + bo_ref[0]

    # ---------------- add + LayerNorm 1 (fused epilogue) ----------------
    x1 = _layernorm(x + attn, g1_ref[0], b1_ref[0], eps)

    # ---------------- feed-forward ----------------
    h1 = jnp.dot(x1.astype(BF16), w1_ref[0],
                 preferred_element_type=F32) + bb1_ref[0]
    h1 = jnp.maximum(h1, 0.0)                                         # relu
    h2 = jnp.dot(h1.astype(BF16), w2_ref[0],
                 preferred_element_type=F32) + bb2_ref[0]

    # ---------------- add + LayerNorm 2 (fused epilogue) ----------------
    o_ref[...] = _layernorm(x1 + h2, g2_ref[0], b2_ref[0], eps)


def transformer_block(x_sbe, params, *, batch_shards=1):
    """x_sbe: (S, B, E) f32 tokens (PyTorch batch_first=False layout).

    batch_shards > 1 splits the batch over a leading "parallel" grid axis so
    multi-TensorCore chips (v7x / megacore) run shards concurrently.
    """
    s, b, e = x_sbe.shape
    assert e == PROJECTION_DIM
    assert b % batch_shards == 0
    heads = NUM_HEADS
    dh = e // heads
    n = s * b
    bp = b // batch_shards            # batches per shard
    rows = bp * s                     # token rows per shard
    ff = params["w1"].shape[-1]
    num_layers = params["wqkv"].shape[0]
    z = heads * s

    # Batch-major token rows so per-batch attention is a contiguous reshape.
    tok = jnp.transpose(x_sbe, (1, 0, 2)).reshape(n, e).astype(F32)

    # Block-diagonal head-selection mask M[(h,t),(h',d)] = [h == h'] (0/1 f32).
    msk = ((jnp.arange(z, dtype=jnp.int32)[:, None] // s)
           == (jnp.arange(e, dtype=jnp.int32)[None, :] // dh)).astype(F32)

    kern = functools.partial(_tf_block_kernel,
                             batch=bp, seq=s, heads=heads, eps=LN_EPS)

    def wspec(shape):                 # per-layer weight: stream block l
        return pl.BlockSpec(shape, lambda bs, l: (l, 0, 0))

    out = pl.pallas_call(
        kern,
        out_shape=jax.ShapeDtypeStruct((n, e), F32),
        grid=(batch_shards, num_layers),
        in_specs=[
            pl.BlockSpec((rows, e), lambda bs, l: (bs, 0)),   # tokens (per shard)
            pl.BlockSpec((z, e), lambda bs, l: (0, 0)),       # head mask (fetched once)
            wspec((1, e, 3 * e)),                             # in_proj W (Q pre-scaled)
            wspec((1, 1, 3 * e)),                             # in_proj b
            wspec((1, e, e)),                                 # out_proj W
            wspec((1, 1, e)),                                 # out_proj b
            wspec((1, 1, e)),                                 # ln1 gamma
            wspec((1, 1, e)),                                 # ln1 beta
            wspec((1, e, ff)),                                # ff1 W
            wspec((1, 1, ff)),                                # ff1 b
            wspec((1, ff, e)),                                # ff2 W
            wspec((1, 1, e)),                                 # ff2 b
            wspec((1, 1, e)),                                 # ln2 gamma
            wspec((1, 1, e)),                                 # ln2 beta
        ],
        out_specs=pl.BlockSpec((rows, e), lambda bs, l: (bs, 0)),
        input_output_aliases={0: 0},                          # donate token buffer
        compiler_params=pltpu.CompilerParams(
            dimension_semantics=("parallel", "arbitrary"),    # shards ||, layers seq
            vmem_limit_bytes=32 * 1024 * 1024,                # safe on v5e/v6e/v7x
        ),
    )(tok, msk,
      params["wqkv"], params["bqkv"],
      params["wo"], params["bo"],
      params["g1"], params["b1"],
      params["w1"], params["bb1"],
      params["w2"], params["bb2"],
      params["g2"], params["b2"])

    return out.reshape(b, s, e).transpose(1, 0, 2)     # back to (S, B, E)


# ----------------------------------------------------------------------------
# One-time host-side parameter prep: fold attention scale, cast to bf16
# ----------------------------------------------------------------------------
def prepare_params(params):
    e = PROJECTION_DIM
    dh = e // NUM_HEADS
    scale = 1.0 / math.sqrt(dh)                # 0.25: exact power of two
    wqkv = params["wqkv"].astype(F32).at[:, :, :e].multiply(scale)
    bqkv = params["bqkv"].astype(F32).at[:, :, :e].multiply(scale)
    p = dict(params)
    p["wqkv"] = wqkv.astype(BF16)
    p["bqkv"] = bqkv
    for kname in ("wo", "w1", "w2"):
        p[kname] = params[kname].astype(BF16)
    return p


# ----------------------------------------------------------------------------
# Deterministic synthetic parameters (shapes follow nn.TransformerEncoderLayer)
# ----------------------------------------------------------------------------
def init_params(seed=0):
    root = jax.random.PRNGKey(seed)
    counter = [0]

    def nk():
        counter[0] += 1
        return jax.random.fold_in(root, counter[0])

    e, ff, L = PROJECTION_DIM, FFN_DIM, NUM_LAYERS

    def w(shape, fan_in):
        return (jax.random.normal(nk(), shape, F32) / math.sqrt(fan_in)).astype(BF16)

    def bias(shape):
        return 0.01 * jax.random.normal(nk(), shape, F32)

    return {
        "wqkv": w((L, e, 3 * e), e), "bqkv": bias((L, 1, 3 * e)),
        "wo":   w((L, e, e), e),     "bo":   bias((L, 1, e)),
        "g1": jnp.ones((L, 1, e), F32), "b1": jnp.zeros((L, 1, e), F32),
        "w1":   w((L, e, ff), e),    "bb1":  bias((L, 1, ff)),
        "w2":   w((L, ff, e), ff),   "bb2":  bias((L, 1, e)),
        "g2": jnp.ones((L, 1, e), F32), "b2": jnp.zeros((L, 1, e), F32),
    }


# ----------------------------------------------------------------------------
# Pure-JAX reference (same bf16 weight/input rounding, f32 accumulation)
# ----------------------------------------------------------------------------
def _ln_ref(x, g, b, eps=LN_EPS):
    mu = jnp.mean(x, axis=-1, keepdims=True)
    d = x - mu
    var = jnp.mean(d * d, axis=-1, keepdims=True)
    return d * jax.lax.rsqrt(var + eps) * g + b


def reference_forward(x_sbe, params):
    s, b, e = x_sbe.shape
    h, dh = NUM_HEADS, e // NUM_HEADS

    def mm(a, wt):
        return jnp.dot(a.astype(BF16), wt.astype(BF16), preferred_element_type=F32)

    x = x_sbe.astype(F32)
    for l in range(params["wqkv"].shape[0]):
        qkv = mm(x, params["wqkv"][l]) + params["bqkv"][l][0]       # (S,B,3E)
        q, k, v = qkv[..., :e], qkv[..., e:2 * e], qkv[..., 2 * e:]
        q = q.reshape(s, b, h, dh)
        k = k.reshape(s, b, h, dh)
        v = v.reshape(s, b, h, dh)
        sc = jnp.einsum("sbhd,tbhd->bhst", q.astype(BF16), k.astype(BF16),
                        preferred_element_type=F32) / math.sqrt(dh)
        p = jax.nn.softmax(sc, axis=-1)
        o = jnp.einsum("bhst,tbhd->sbhd", p.astype(BF16), v.astype(BF16),
                       preferred_element_type=F32).reshape(s, b, e)
        attn = mm(o, params["wo"][l]) + params["bo"][l][0]
        x1 = _ln_ref(x + attn, params["g1"][l][0], params["b1"][l][0])
        h1 = jnp.maximum(mm(x1, params["w1"][l]) + params["bb1"][l][0], 0.0)
        h2 = mm(h1, params["w2"][l]) + params["bb2"][l][0]
        x = _ln_ref(x1 + h2, params["g2"][l][0], params["b2"][l][0])
    return x


# ----------------------------------------------------------------------------
if __name__ == "__main__":
    S, B, E = 16, 4, PROJECTION_DIM          # (seq, batch, embed); batch_first=False
    params = init_params(seed=0)
    kparams = prepare_params(params)
    x = jax.random.normal(jax.random.PRNGKey(0), (S, B, E), F32)

    ref = reference_forward(x, params)

    # Default schedule (single batch shard): v5e / v6e path.
    fwd = jax.jit(transformer_block)
    out = jax.block_until_ready(fwd(x, kparams))
    assert out.shape == (S, B, E), out.shape
    assert out.dtype == jnp.float32
    assert bool(jnp.all(jnp.isfinite(out)))
    err = float(jnp.max(jnp.abs(out - ref)))
    assert err < 3e-2, f"batch_shards=1: max abs diff vs reference = {err}"

    # Batch-parallel leading grid axis: uses both TensorCores on v7x/megacore.
    fwd2 = jax.jit(functools.partial(transformer_block, batch_shards=2))
    out2 = jax.block_until_ready(fwd2(x, kparams))
    err2 = float(jnp.max(jnp.abs(out2 - ref)))
    assert err2 < 3e-2, f"batch_shards=2: max abs diff vs reference = {err2}"

    print("KERNEL_OK")
</pallas_src>

<mosaic_0001>
module attributes {stable_mosaic.version = 11 : i64} {
  func.func @_tf_block_kernel(%arg0: i32, %arg1: i32, %arg2: memref<64x128xf32, #tpu.memory_space<vmem>>, %arg3: memref<128x128xf32, #tpu.memory_space<vmem>>, %arg4: memref<1x128x384xbf16, #tpu.memory_space<vmem>>, %arg5: memref<1x1x384xf32, #tpu.memory_space<vmem>>, %arg6: memref<1x128x128xbf16, #tpu.memory_space<vmem>>, %arg7: memref<1x1x128xf32, #tpu.memory_space<vmem>>, %arg8: memref<1x1x128xf32, #tpu.memory_space<vmem>>, %arg9: memref<1x1x128xf32, #tpu.memory_space<vmem>>, %arg10: memref<1x128x256xbf16, #tpu.memory_space<vmem>>, %arg11: memref<1x1x256xf32, #tpu.memory_space<vmem>>, %arg12: memref<1x256x128xbf16, #tpu.memory_space<vmem>>, %arg13: memref<1x1x128xf32, #tpu.memory_space<vmem>>, %arg14: memref<1x1x128xf32, #tpu.memory_space<vmem>>, %arg15: memref<1x1x128xf32, #tpu.memory_space<vmem>>, %arg16: memref<64x128xf32, #tpu.memory_space<vmem>>) attributes {dimension_semantics = [#tpu.dimension_semantics<parallel>, #tpu.dimension_semantics<arbitrary>], iteration_bounds = array<i64: 1, 4>, scalar_prefetch = 0 : i64, scratch_operands = 0 : i64, tpu.core_type = #tpu.core_type<tc>, window_params = [{transform_indices = @transform_0, window_bounds = array<i64: 64, 128>}, {pipeline_mode = #tpu.pipeline_mode<synchronous>, transform_indices = @transform_1, window_bounds = array<i64: 128, 128>}, {transform_indices = @transform_2, window_bounds = array<i64: 1, 128, 384>}, {transform_indices = @transform_3, window_bounds = array<i64: 1, 1, 384>}, {transform_indices = @transform_4, window_bounds = array<i64: 1, 128, 128>}, {transform_indices = @transform_5, window_bounds = array<i64: 1, 1, 128>}, {transform_indices = @transform_6, window_bounds = array<i64: 1, 1, 128>}, {transform_indices = @transform_7, window_bounds = array<i64: 1, 1, 128>}, {transform_indices = @transform_8, window_bounds = array<i64: 1, 128, 256>}, {transform_indices = @transform_9, window_bounds = array<i64: 1, 1, 256>}, {transform_indices = @transform_10, window_bounds = array<i64: 1, 256, 128>}, {transform_indices = @transform_11, window_bounds = array<i64: 1, 1, 128>}, {transform_indices = @transform_12, window_bounds = array<i64: 1, 1, 128>}, {transform_indices = @transform_13, window_bounds = array<i64: 1, 1, 128>}, {transform_indices = @transform_14, window_bounds = array<i64: 64, 128>}]} {
    %c0_i32 = arith.constant 0 : i32
    %0 = arith.cmpi eq, %arg1, %c0_i32 : i32
    %1 = arith.extui %0 : i1 to i32
    %c0_i32_0 = arith.constant 0 : i32
    %2 = arith.cmpi ne, %1, %c0_i32_0 : i32
    scf.if %2 {
      %c0_61 = arith.constant 0 : index
      %c0_62 = arith.constant 0 : index
      %122 = vector.load %arg2[%c0_61, %c0_62] : memref<64x128xf32, #tpu.memory_space<vmem>>, vector<64x128xf32>
      %c0_63 = arith.constant 0 : index
      %c0_64 = arith.constant 0 : index
      %123 = vector.load %arg16[%c0_63, %c0_64] : memref<64x128xf32, #tpu.memory_space<vmem>>, vector<64x128xf32>
      tpu.vector_store %arg16[%c0_63, %c0_64], %122 {strides = array<i32>} : memref<64x128xf32, #tpu.memory_space<vmem>>, vector<64x128xf32>,
    } else {
    }
    %c0 = arith.constant 0 : index
    %c0_1 = arith.constant 0 : index
    %3 = vector.load %arg16[%c0, %c0_1] : memref<64x128xf32, #tpu.memory_space<vmem>>, vector<64x128xf32>
    %4 = arith.truncf %3 : vector<64x128xf32> to vector<64x128xbf16>
    %c0_2 = arith.constant 0 : index
    %c0_3 = arith.constant 0 : index
    %5 = vector.load %arg3[%c0_2, %c0_3] : memref<128x128xf32, #tpu.memory_space<vmem>>, vector<128x128xf32>
    %c0_4 = arith.constant 0 : index
    %c0_5 = arith.constant 0 : index
    %c0_6 = arith.constant 0 : index
    %6 = vector.load %arg4[%c0_4, %c0_5, %c0_6] : memref<1x128x384xbf16, #tpu.memory_space<vmem>>, vector<1x128x384xbf16>
    %7 = vector.shape_cast %6 : vector<1x128x384xbf16> to vector<128x384xbf16>
    %cst = arith.constant dense<0.000000e+00> : vector<64x384xf32>
    %8 = tpu.matmul %4, %7, %cst {dimension_numbers = #tpu.dot_dimension_numbers<[1], [0], [0], [1], [0, 0, 1, 1], [], []>} : vector<64x128xbf16>, vector<128x384xbf16>, vector<64x384xf32> -> vector<64x384xf32>
    %c0_7 = arith.constant 0 : index
    %c0_8 = arith.constant 0 : index
    %c0_9 = arith.constant 0 : index
    %9 = vector.load %arg5[%c0_7, %c0_8, %c0_9] : memref<1x1x384xf32, #tpu.memory_space<vmem>>, vector<1x1x384xf32>
    %10 = vector.shape_cast %9 : vector<1x1x384xf32> to vector<1x384xf32>
    %11 = vector.broadcast %10 : vector<1x384xf32> to vector<64x384xf32>
    %12 = arith.addf %8, %11 : vector<64x384xf32>
    %13 = vector.extract_strided_slice %12 {offsets = [0, 0], sizes = [64, 128], strides = [1, 1]} : vector<64x384xf32> to vector<64x128xf32>
    %14 = vector.shape_cast %13 : vector<64x128xf32> to vector<4x16x128xf32>
    %15 = vector.extract_strided_slice %12 {offsets = [0, 128], sizes = [64, 128], strides = [1, 1]} : vector<64x384xf32> to vector<64x128xf32>
    %16 = vector.shape_cast %15 : vector<64x128xf32> to vector<4x16x128xf32>
    %17 = vector.extract_strided_slice %12 {offsets = [0, 256], sizes = [64, 128], strides = [1, 1]} : vector<64x384xf32> to vector<64x128xf32>
    %18 = vector.shape_cast %17 : vector<64x128xf32> to vector<4x16x128xf32>
    %19 = tpu.concatenate %16, %16, %16, %16, %16, %16, %16, %16 in 1 : vector<4x16x128xf32>, vector<4x16x128xf32>, vector<4x16x128xf32>, vector<4x16x128xf32>, vector<4x16x128xf32>, vector<4x16x128xf32>, vector<4x16x128xf32>, vector<4x16x128xf32> -> vector<4x128x128xf32>
    %20 = vector.shape_cast %5 : vector<128x128xf32> to vector<1x128x128xf32>
    %21 = vector.broadcast %20 : vector<1x128x128xf32> to vector<4x128x128xf32>
    %22 = arith.mulf %19, %21 : vector<4x128x128xf32>
    %23 = arith.truncf %22 : vector<4x128x128xf32> to vector<4x128x128xbf16>
    %24 = tpu.concatenate %18, %18, %18, %18, %18, %18, %18, %18 in 1 : vector<4x16x128xf32>, vector<4x16x128xf32>, vector<4x16x128xf32>, vector<4x16x128xf32>, vector<4x16x128xf32>, vector<4x16x128xf32>, vector<4x16x128xf32>, vector<4x16x128xf32> -> vector<4x128x128xf32>
    %25 = vector.shape_cast %5 : vector<128x128xf32> to vector<1x128x128xf32>
    %26 = vector.broadcast %25 : vector<1x128x128xf32> to vector<4x128x128xf32>
    %27 = arith.mulf %24, %26 : vector<4x128x128xf32>
    %28 = arith.truncf %27 : vector<4x128x128xf32> to vector<4x128x128xbf16>
    %29 = arith.truncf %14 : vector<4x16x128xf32> to vector<4x16x128xbf16>
    "tpu.trace_start"() <{level = 10 : i32, message = "bqe,bze->bqz"}> : () -> ()
    %cst_10 = arith.constant dense<0.000000e+00> : vector<4x16x128xf32>
    %30 = tpu.matmul %29, %23, %cst_10 {dimension_numbers = #tpu.dot_dimension_numbers<[2], [2], [1], [1], [0, 0, 0, 1, 1, 1], [0], [0]>} : vector<4x16x128xbf16>, vector<4x128x128xbf16>, vector<4x16x128xf32> -> vector<4x16x128xf32>
    "tpu.trace_stop"() : () -> ()
    %cst_11 = arith.constant dense<0xFF800000> : vector<4x16xf32>
    %31 = vector.multi_reduction <maximumf>, %30, %cst_11 [2] : vector<4x16x128xf32> to vector<4x16xf32>
    %32 = vector.shape_cast %31 : vector<4x16xf32> to vector<4x16x1xf32>
    %33 = vector.broadcast %32 : vector<4x16x1xf32> to vector<4x16x128xf32>
    %34 = arith.subf %30, %33 : vector<4x16x128xf32>
    %35 = math.exp %34 : vector<4x16x128xf32>
    %36 = arith.truncf %35 : vector<4x16x128xf32> to vector<4x16x128xbf16>
    "tpu.trace_start"() <{level = 10 : i32, message = "bqz,bze->bqe"}> : () -> ()
    %cst_12 = arith.constant dense<0.000000e+00> : vector<4x16x128xf32>
    %37 = tpu.matmul %36, %28, %cst_12 {dimension_numbers = #tpu.dot_dimension_numbers<[2], [1], [1], [2], [0, 0, 0, 1, 1, 2], [0], [0]>} : vector<4x16x128xbf16>, vector<4x128x128xbf16>, vector<4x16x128xf32> -> vector<4x16x128xf32>
    "tpu.trace_stop"() : () -> ()
    %38 = vector.shape_cast %37 : vector<4x16x128xf32> to vector<64x128xf32>
    %39 = vector.shape_cast %35 : vector<4x16x128xf32> to vector<64x128xf32>
    %cst_13 = arith.constant dense<0.000000e+00> : vector<64x128xf32>
    %40 = tpu.matmul %39, %5, %cst_13 {dimension_numbers = #tpu.dot_dimension_numbers<[1], [0], [0], [1], [0, 0, 1, 1], [], []>} : vector<64x128xf32>, vector<128x128xf32>, vector<64x128xf32> -> vector<64x128xf32>
    %cst_14 = arith.constant 1.000000e-30 : f32
    %41 = vector.broadcast %cst_14 : f32 to vector<64x128xf32>
    %42 = arith.maximumf %40, %41 : vector<64x128xf32>
    %43 = tpu.reciprocal %42 {approx = true} : vector<64x128xf32> -> vector<64x128xf32>
    %44 = arith.mulf %38, %43 : vector<64x128xf32>
    %45 = arith.truncf %44 : vector<64x128xf32> to vector<64x128xbf16>
    %c0_15 = arith.constant 0 : index
    %c0_16 = arith.constant 0 : index
    %c0_17 = arith.constant 0 : index
    %46 = vector.load %arg6[%c0_15, %c0_16, %c0_17] : memref<1x128x128xbf16, #tpu.memory_space<vmem>>, vector<1x128x128xbf16>
    %47 = vector.shape_cast %46 : vector<1x128x128xbf16> to vector<128x128xbf16>
    %cst_18 = arith.constant dense<0.000000e+00> : vector<64x128xf32>
    %48 = tpu.matmul %45, %47, %cst_18 {dimension_numbers = #tpu.dot_dimension_numbers<[1], [0], [0], [1], [0, 0, 1, 1], [], []>} : vector<64x128xbf16>, vector<128x128xbf16>, vector<64x128xf32> -> vector<64x128xf32>
    %c0_19 = arith.constant 0 : index
    %c0_20 = arith.constant 0 : index
    %c0_21 = arith.constant 0 : index
    %49 = vector.load %arg7[%c0_19, %c0_20, %c0_21] : memref<1x1x128xf32, #tpu.memory_space<vmem>>, vector<1x1x128xf32>
    %50 = vector.shape_cast %49 : vector<1x1x128xf32> to vector<1x128xf32>
    %51 = vector.broadcast %50 : vector<1x128xf32> to vector<64x128xf32>
    %52 = arith.addf %48, %51 : vector<64x128xf32>
    %53 = arith.addf %3, %52 : vector<64x128xf32>
    %c0_22 = arith.constant 0 : index
    %c0_23 = arith.constant 0 : index
    %c0_24 = arith.constant 0 : index
    %54 = vector.load %arg8[%c0_22, %c0_23, %c0_24] : memref<1x1x128xf32, #tpu.memory_space<vmem>>, vector<1x1x128xf32>
    %55 = vector.shape_cast %54 : vector<1x1x128xf32> to vector<1x128xf32>
    %c0_25 = arith.constant 0 : index
    %c0_26 = arith.constant 0 : index
    %c0_27 = arith.constant 0 : index
    %56 = vector.load %arg9[%c0_25, %c0_26, %c0_27] : memref<1x1x128xf32, #tpu.memory_space<vmem>>, vector<1x1x128xf32>
    %57 = vector.shape_cast %56 : vector<1x1x128xf32> to vector<1x128xf32>
    %cst_28 = arith.constant dense<0.000000e+00> : vector<64xf32>
    %58 = vector.multi_reduction <add>, %53, %cst_28 [1] : vector<64x128xf32> to vector<64xf32>
    %59 = vector.shape_cast %58 : vector<64xf32> to vector<64x1xf32>
    %cst_29 = arith.constant 1.280000e+02 : f32
    %60 = vector.broadcast %cst_29 : f32 to vector<64x1xf32>
    %61 = arith.divf %59, %60 : vector<64x1xf32>
    %62 = vector.broadcast %61 : vector<64x1xf32> to vector<64x128xf32>
    %63 = arith.subf %53, %62 : vector<64x128xf32>
    %64 = arith.mulf %63, %63 : vector<64x128xf32>
    %cst_30 = arith.constant dense<0.000000e+00> : vector<64xf32>
    %65 = vector.multi_reduction <add>, %64, %cst_30 [1] : vector<64x128xf32> to vector<64xf32>
    %66 = vector.shape_cast %65 : vector<64xf32> to vector<64x1xf32>
    %cst_31 = arith.constant 1.280000e+02 : f32
    %67 = vector.broadcast %cst_31 : f32 to vector<64x1xf32>
    %68 = arith.divf %66, %67 : vector<64x1xf32>
    %cst_32 = arith.constant 9.99999974E-6 : f32
    %69 = vector.broadcast %cst_32 : f32 to vector<64x1xf32>
    %70 = arith.addf %68, %69 : vector<64x1xf32>
    %71 = math.rsqrt %70 : vector<64x1xf32>
    %72 = vector.broadcast %71 : vector<64x1xf32> to vector<64x128xf32>
    %73 = arith.mulf %63, %72 : vector<64x128xf32>
    %74 = vector.broadcast %55 : vector<1x128xf32> to vector<64x128xf32>
    %75 = arith.mulf %73, %74 : vector<64x128xf32>
    %76 = vector.broadcast %57 : vector<1x128xf32> to vector<64x128xf32>
    %77 = arith.addf %75, %76 : vector<64x128xf32>
    %78 = arith.truncf %77 : vector<64x128xf32> to vector<64x128xbf16>
    %c0_33 = arith.constant 0 : index
    %c0_34 = arith.constant 0 : index
    %c0_35 = arith.constant 0 : index
    %79 = vector.load %arg10[%c0_33, %c0_34, %c0_35] : memref<1x128x256xbf16, #tpu.memory_space<vmem>>, vector<1x128x256xbf16>
    %80 = vector.shape_cast %79 : vector<1x128x256xbf16> to vector<128x256xbf16>
    %cst_36 = arith.constant dense<0.000000e+00> : vector<64x256xf32>
    %81 = tpu.matmul %78, %80, %cst_36 {dimension_numbers = #tpu.dot_dimension_numbers<[1], [0], [0], [1], [0, 0, 1, 1], [], []>} : vector<64x128xbf16>, vector<128x256xbf16>, vector<64x256xf32> -> vector<64x256xf32>
    %c0_37 = arith.constant 0 : index
    %c0_38 = arith.constant 0 : index
    %c0_39 = arith.constant 0 : index
    %82 = vector.load %arg11[%c0_37, %c0_38, %c0_39] : memref<1x1x256xf32, #tpu.memory_space<vmem>>, vector<1x1x256xf32>
    %83 = vector.shape_cast %82 : vector<1x1x256xf32> to vector<1x256xf32>
    %84 = vector.broadcast %83 : vector<1x256xf32> to vector<64x256xf32>
    %85 = arith.addf %81, %84 : vector<64x256xf32>
    %cst_40 = arith.constant 0.000000e+00 : f32
    %86 = vector.broadcast %cst_40 : f32 to vector<64x256xf32>
    %87 = arith.maximumf %85, %86 : vector<64x256xf32>
    %88 = arith.truncf %87 : vector<64x256xf32> to vector<64x256xbf16>
    %c0_41 = arith.constant 0 : index
    %c0_42 = arith.constant 0 : index
    %c0_43 = arith.constant 0 : index
    %89 = vector.load %arg12[%c0_41, %c0_42, %c0_43] : memref<1x256x128xbf16, #tpu.memory_space<vmem>>, vector<1x256x128xbf16>
    %90 = vector.shape_cast %89 : vector<1x256x128xbf16> to vector<256x128xbf16>
    %cst_44 = arith.constant dense<0.000000e+00> : vector<64x128xf32>
    %91 = tpu.matmul %88, %90, %cst_44 {dimension_numbers = #tpu.dot_dimension_numbers<[1], [0], [0], [1], [0, 0, 1, 1], [], []>} : vector<64x256xbf16>, vector<256x128xbf16>, vector<64x128xf32> -> vector<64x128xf32>
    %c0_45 = arith.constant 0 : index
    %c0_46 = arith.constant 0 : index
    %c0_47 = arith.constant 0 : index
    %92 = vector.load %arg13[%c0_45, %c0_46, %c0_47] : memref<1x1x128xf32, #tpu.memory_space<vmem>>, vector<1x1x128xf32>
    %93 = vector.shape_cast %92 : vector<1x1x128xf32> to vector<1x128xf32>
    %94 = vector.broadcast %93 : vector<1x128xf32> to vector<64x128xf32>
    %95 = arith.addf %91, %94 : vector<64x128xf32>
    %96 = arith.addf %77, %95 : vector<64x128xf32>
    %c0_48 = arith.constant 0 : index
    %c0_49 = arith.constant 0 : index
    %c0_50 = arith.constant 0 : index
    %97 = vector.load %arg14[%c0_48, %c0_49, %c0_50] : memref<1x1x128xf32, #tpu.memory_space<vmem>>, vector<1x1x128xf32>
    %98 = vector.shape_cast %97 : vector<1x1x128xf32> to vector<1x128xf32>
    %c0_51 = arith.constant 0 : index
    %c0_52 = arith.constant 0 : index
    %c0_53 = arith.constant 0 : index
    %99 = vector.load %arg15[%c0_51, %c0_52, %c0_53] : memref<1x1x128xf32, #tpu.memory_space<vmem>>, vector<1x1x128xf32>
    %100 = vector.shape_cast %99 : vector<1x1x128xf32> to vector<1x128xf32>
    %cst_54 = arith.constant dense<0.000000e+00> : vector<64xf32>
    %101 = vector.multi_reduction <add>, %96, %cst_54 [1] : vector<64x128xf32> to vector<64xf32>
    %102 = vector.shape_cast %101 : vector<64xf32> to vector<64x1xf32>
    %cst_55 = arith.constant 1.280000e+02 : f32
    %103 = vector.broadcast %cst_55 : f32 to vector<64x1xf32>
    %104 = arith.divf %102, %103 : vector<64x1xf32>
    %105 = vector.broadcast %104 : vector<64x1xf32> to vector<64x128xf32>
    %106 = arith.subf %96, %105 : vector<64x128xf32>
    %107 = arith.mulf %106, %106 : vector<64x128xf32>
    %cst_56 = arith.constant dense<0.000000e+00> : vector<64xf32>
    %108 = vector.multi_reduction <add>, %107, %cst_56 [1] : vector<64x128xf32> to vector<64xf32>
    %109 = vector.shape_cast %108 : vector<64xf32> to vector<64x1xf32>
    %cst_57 = arith.constant 1.280000e+02 : f32
    %110 = vector.broadcast %cst_57 : f32 to vector<64x1xf32>
    %111 = arith.divf %109, %110 : vector<64x1xf32>
    %cst_58 = arith.constant 9.99999974E-6 : f32
    %112 = vector.broadcast %cst_58 : f32 to vector<64x1xf32>
    %113 = arith.addf %111, %112 : vector<64x1xf32>
    %114 = math.rsqrt %113 : vector<64x1xf32>
    %115 = vector.broadcast %114 : vector<64x1xf32> to vector<64x128xf32>
    %116 = arith.mulf %106, %115 : vector<64x128xf32>
    %117 = vector.broadcast %98 : vector<1x128xf32> to vector<64x128xf32>
    %118 = arith.mulf %116, %117 : vector<64x128xf32>
    %119 = vector.broadcast %100 : vector<1x128xf32> to vector<64x128xf32>
    %120 = arith.addf %118, %119 : vector<64x128xf32>
    %c0_59 = arith.constant 0 : index
    %c0_60 = arith.constant 0 : index
    %121 = vector.load %arg16[%c0_59, %c0_60] : memref<64x128xf32, #tpu.memory_space<vmem>>, vector<64x128xf32>
    tpu.vector_store %arg16[%c0_59, %c0_60], %120 {strides = array<i32>} : memref<64x128xf32, #tpu.memory_space<vmem>>, vector<64x128xf32>,
    return
  }
  func.func @transform_0(%arg0: i32, %arg1: i32) -> (i32, i32) {
    %c0_i32 = arith.constant 0 : i32
    %c0_i32_0 = arith.constant 0 : i32
    return %arg0, %c0_i32 : i32, i32
  }
  func.func @transform_1(%arg0: i32, %arg1: i32) -> (i32, i32) {
    %c0_i32 = arith.constant 0 : i32
    %c0_i32_0 = arith.constant 0 : i32
    %c0_i32_1 = arith.constant 0 : i32
    return %c0_i32, %c0_i32_0 : i32, i32
  }
  func.func @transform_2(%arg0: i32, %arg1: i32) -> (i32, i32, i32) {
    %c0_i32 = arith.constant 0 : i32
    %c0_i32_0 = arith.constant 0 : i32
    %c0_i32_1 = arith.constant 0 : i32
    return %arg1, %c0_i32, %c0_i32_0 : i32, i32, i32
  }
  func.func @transform_3(%arg0: i32, %arg1: i32) -> (i32, i32, i32) {
    %c0_i32 = arith.constant 0 : i32
    %c0_i32_0 = arith.constant 0 : i32
    %c0_i32_1 = arith.constant 0 : i32
    return %arg1, %c0_i32, %c0_i32_0 : i32, i32, i32
  }
  func.func @transform_4(%arg0: i32, %arg1: i32) -> (i32, i32, i32) {
    %c0_i32 = arith.constant 0 : i32
    %c0_i32_0 = arith.constant 0 : i32
    %c0_i32_1 = arith.constant 0 : i32
    return %arg1, %c0_i32, %c0_i32_0 : i32, i32, i32
  }
  func.func @transform_5(%arg0: i32, %arg1: i32) -> (i32, i32, i32) {
    %c0_i32 = arith.constant 0 : i32
    %c0_i32_0 = arith.constant 0 : i32
    %c0_i32_1 = arith.constant 0 : i32
    return %arg1, %c0_i32, %c0_i32_0 : i32, i32, i32
  }
  func.func @transform_6(%arg0: i32, %arg1: i32) -> (i32, i32, i32) {
    %c0_i32 = arith.constant 0 : i32
    %c0_i32_0 = arith.constant 0 : i32
    %c0_i32_1 = arith.constant 0 : i32
    return %arg1, %c0_i32, %c0_i32_0 : i32, i32, i32
  }
  func.func @transform_7(%arg0: i32, %arg1: i32) -> (i32, i32, i32) {
    %c0_i32 = arith.constant 0 : i32
    %c0_i32_0 = arith.constant 0 : i32
    %c0_i32_1 = arith.constant 0 : i32
    return %arg1, %c0_i32, %c0_i32_0 : i32, i32, i32
  }
  func.func @transform_8(%arg0: i32, %arg1: i32) -> (i32, i32, i32) {
    %c0_i32 = arith.constant 0 : i32
    %c0_i32_0 = arith.constant 0 : i32
    %c0_i32_1 = arith.constant 0 : i32
    return %arg1, %c0_i32, %c0_i32_0 : i32, i32, i32
  }
  func.func @transform_9(%arg0: i32, %arg1: i32) -> (i32, i32, i32) {
    %c0_i32 = arith.constant 0 : i32
    %c0_i32_0 = arith.constant 0 : i32
    %c0_i32_1 = arith.constant 0 : i32
    return %arg1, %c0_i32, %c0_i32_0 : i32, i32, i32
  }
  func.func @transform_10(%arg0: i32, %arg1: i32) -> (i32, i32, i32) {
    %c0_i32 = arith.constant 0 : i32
    %c0_i32_0 = arith.constant 0 : i32
    %c0_i32_1 = arith.constant 0 : i32
    return %arg1, %c0_i32, %c0_i32_0 : i32, i32, i32
  }
  func.func @transform_11(%arg0: i32, %arg1: i32) -> (i32, i32, i32) {
    %c0_i32 = arith.constant 0 : i32
    %c0_i32_0 = arith.constant 0 : i32
    %c0_i32_1 = arith.constant 0 : i32
    return %arg1, %c0_i32, %c0_i32_0 : i32, i32, i32
  }
  func.func @transform_12(%arg0: i32, %arg1: i32) -> (i32, i32, i32) {
    %c0_i32 = arith.constant 0 : i32
    %c0_i32_0 = arith.constant 0 : i32
    %c0_i32_1 = arith.constant 0 : i32
    return %arg1, %c0_i32, %c0_i32_0 : i32, i32, i32
  }
  func.func @transform_13(%arg0: i32, %arg1: i32) -> (i32, i32, i32) {
    %c0_i32 = arith.constant 0 : i32
    %c0_i32_0 = arith.constant 0 : i32
    %c0_i32_1 = arith.constant 0 : i32
    return %arg1, %c0_i32, %c0_i32_0 : i32, i32, i32
  }
  func.func @transform_14(%arg0: i32, %arg1: i32) -> (i32, i32) {
    %c0_i32 = arith.constant 0 : i32
    %c0_i32_0 = arith.constant 0 : i32
    return %arg0, %c0_i32 : i32, i32
  }
}

</mosaic_0001>

<bundles_post_ra>
// kernel: transformer_block.1
= control target key start
LH: loop header
LB: loop body
LE: loop exit
PB: predicated region body
PF: predicated region fallthrough
CT: control target
= control target key end

     0   :  { %s5425_s0 = inlined_call_operand.vmem [shape: f32[64,128], index: 0, kind: input, shape index: {}, may-alias: {0,14}]   ;;  %s5426_s1 = inlined_call_operand.vmem [shape: f32[128,128], index: 1, kind: input, shape index: {}]   ;;  %s5427_s2 = inlined_call_operand.hbm [shape: bf16[4,128,384], index: 2, kind: input, shape index: {}]   ;;  %s5428_s3 = inlined_call_operand.vmem [shape: f32[4,1,384], index: 3, kind: input, shape index: {}]   ;;  %s5429_s4 = inlined_call_operand.vmem [shape: bf16[4,128,128], index: 4, kind: input, shape index: {}]   ;;  %s5430_s5 = inlined_call_operand.vmem [shape: f32[4,1,128], index: 5, kind: input, shape index: {}]   ;;  %s5431_s6 = inlined_call_operand.hbm [shape: f32[4,1,128], index: 6, kind: input, shape index: {}]   ;;  %s5432_s7 = inlined_call_operand.hbm [shape: f32[4,1,128], index: 7, kind: input, shape index: {}]   ;;  %s5433_s8 = inlined_call_operand.hbm [shape: bf16[4,128,256], index: 8, kind: input, shape index: {}]   ;;  %s5434_s9 = inlined_call_operand.vmem [shape: f32[4,1,256], index: 9, kind: input, shape index: {}]   ;;  %s5435_s10 = inlined_call_operand.hbm [shape: bf16[4,256,128], index: 10, kind: input, shape index: {}]   ;;  %s5436_s11 = inlined_call_operand.hbm [shape: f32[4,1,128], index: 11, kind: input, shape index: {}]   ;;  %s5437_s12 = inlined_call_operand.hbm [shape: f32[4,1,128], index: 12, kind: input, shape index: {}]   ;;  %s5438_s13 = inlined_call_operand.hbm [shape: f32[4,1,128], index: 13, kind: input, shape index: {}]   ;;  %s5439_s14 = inlined_call_operand.vmem [shape: f32[64,128], index: 14, kind: output, shape index: {}, may-alias: {0,14}]  }
   0x1   :  { %5467 = sst [smem:[#allocation33_spill]] %s5425_s0 }
   0x2   :  { %5468 = sst [smem:[#allocation34_spill]] %s5426_s1 }
   0x3   :  { %5469 = sst [smem:[#allocation35_spill]] %s5427_s2 }
   0x4   :  { %5470 = sst [smem:[#allocation36_spill]] %s5428_s3 }
   0x5   :  { %5471 = sst [smem:[#allocation37_spill]] %s5429_s4 }
   0x6   :  { %5472 = sst [smem:[#allocation38_spill]] %s5430_s5 }
   0x7   :  { %5473 = sst [smem:[#allocation39_spill]] %s5431_s6 }
   0x8   :  { %5474 = sst [smem:[#allocation40_spill]] %s5433_s8 }
   0x9   :  { %5475 = sst [smem:[#allocation41_spill]] %s5434_s9 }
   0xa   :  { %5476 = sst [smem:[#allocation42_spill]] %s5439_s14 }
   0xb   :  { %19 = vsyncpa [#allocation3], 0 }
   0xc   :  { %21 = vsyncpa [#allocation3 + $0x1], 0 }
   0xd   :  { %22 = vsyncpa [#allocation5], 0 }
   0xe   :  { %24 = vsyncpa [#allocation5 + $0x1], 0 }
   0xf   :  { %25 = vsyncpa [#allocation8], 0 }
  0x10   :  { %27 = vsyncpa [#allocation8 + $0x1], 0 }
  0x11   :  { %28 = vsyncpa [#allocation11], 0 }
  0x12   :  { %30 = vsyncpa [#allocation11 + $0x1], 0 }
  0x13   :  { %31 = vsyncpa [#allocation14], 0 }
  0x14   :  { %33 = vsyncpa [#allocation14 + $0x1], 0  ;;  %s4124_s29 = smov 0   ;;  %s4126_s30 = smov 0  }
  0x15   :  { %s4128_s15 = smov 0   ;;  %s4130_s16 = smov 0  }
  0x16   :  { %s4132_s17 = smov 0   ;;  %s4134_s18 = smov 0  }
  0x17 LB: > { %5477 = sst [smem:[#allocation20_spill]] %s4014_s30  ;;  %s5440_s19 = sadd.s32 4294967295, %s4030_s18   ;;  %s4030_s18 = sphi %s4134_s18, %s39_s18   ;;  %s4026_s17 = sphi %s4132_s17, %s5549_s17   ;;  %s4022_s16 = sphi %s4130_s16, %s5548_s16   ;;  %s4018_s15 = sphi %s4128_s15, %s5546_s15   ;;  %s4014_s30 = sphi %s4126_s30, %s5545_s30   ;;  %s4010_s29 = sphi %s4124_s29, %s5544_s29  }
  0x18   : > { %5478 = sst [smem:[#allocation21_spill]] %s4018_s15  ;;  %s48_s20 = sadd.s32 1, %s4026_s17 }
  0x19   : > { %5479 = sst [smem:[#allocation22_spill]] %s4022_s16  ;;  %p49_p0 = scmp.ge.s32.totalorder %s48_s20, 4 }
  0x1a   : > { %5480 = sst [smem:[#allocation23_spill]] %s4030_s18  ;;  %s105_s21 = sadd.s32 1, %s4018_s15 }
  0x1b   : > { %p112_p1 = scmp.ne.s32.totalorder %s4018_s15, %s4014_s30  ;;  %p113_p2 = scmp.eq.s32.totalorder %s4030_s18, 0 }
  0x1c   : > { %s5551_s20 = smov (%p49_p0, %s48_s20), 0  ;;  %p118_p4 = scmp.ne.s32.totalorder %s4014_s30, %s4010_s29 }
  0x1d   : > { %5481 = sst [smem:[#allocation24_spill]] %s5551_s20  ;;  %p114_p3 = por %p113_p2, %p112_p1 }
  0x1e   : > { %s102_s22 = ssub.s32 %s4026_s17, %s5551_s20  ;;  %p119_p5 = scmp.eq.s32.totalorder %s5440_s19, 0 }
  0x1f   : > { %p103_p6 = scmp.eq.s32.totalorder %s102_s22, 0  ;;  %p3530_p8 = scmp.lt.s32.totalorder %s4030_s18, 4 }
  0x20   : > { %p4165_p7 = por %p119_p5, %p118_p4  ;;  %s4174_s25 = sand.u32 1, %s4018_s15  }
  0x21   : > { %s4171_s24 = scalar_select %p103_p6, %s4018_s15, %s105_s21  }
  0x22   : > { %s5482_s23 = scalar_select %p4165_p7, 1, 0 }
  0x23   : > { %5484 = sst [smem:[#allocation26_spill]] %s4171_s24  ;;  %p4176_p9 = pnand %p3530_p8, %p114_p3 }
  0x24   : > { %5483 = sst [smem:[#allocation25_spill]] %s5482_s23  ;;  %s4181_s27 = sand.u32 1, %s4030_s18  }
  0x25   : > { %s4184_s28 = sshll.u32 %s4026_s17, 4  ;;  %s511_s29 = scalar_lea.vmem [#allocation4], %s4174_s25 }
  0x26   : > { %s518_s22 = sshll.u32 %s511_s29, 4  ;;  %s5486_s6 = sld [smem:[#allocation39_spill]]  ;;  %s519_s22 = int_to_ptr.vmem [resolvable:$true] %s518_s22 }
  0x27   : > { %s5447_s24 = scalar_lea.sflag [#allocation5], %s4181_s27  ;;  %p4194_p10 = pneg %p4176_p9 }
  0x28   : > { %s3753_s1 = scalar_lea.vmem %s519_s22, 16  ;;  %s4032_s14 = smov [#allocation4]  }
  0x29   : > { %p3754_p11 = scmp.ne.s32.totalorder %s519_s22, %s3753_s1  ;;  %s3758_s0 = sshll.u32 %s4032_s14, 4  ;;  %s3759_s0 = int_to_ptr.vmem [resolvable:$false] %s3758_s0 }
  0x2a   : > { %s3760_s29 = scalar_lea.vmem %s3759_s0, 32  ;;  %p3761_p0 = scmp.lt.s32.totalorder %s519_s22, %s3759_s0 }
  0x2b   : > { %p3756_p12 = pnand %p3754_p11, %p4194_p10  ;;  %p3762_p1 = scmp.lt.s32.totalorder %s3760_s29, %s3753_s1 }
  0x2c   : > { %s516_s21 = scalar_lea.hbm %s5486_s6, %s4184_s28 }
  0x2d   : > { %p3757_p13 = pneg %p3756_p12  ;;  %p3763_p2 = por %p3762_p1, %p3761_p0 }
  0x2f   : > { %p3764_p3 = pnand %p3763_p2, %p3757_p13 }
  0x31   : > { %3767 = shalt.err (!%p3764_p3)
}
  0x32   : > { %3511 = dma.hbm_to_vmem [thread:$0]  (!%p4176_p9), %s516_s21, 16, %s519_s22, %s5447_s24  }
  0x33   : > { %p2989_p4 = scmp.ge.s32.totalorder %s4030_s18, 1  ;;  %p640_p5 = scmp.lt.s32.totalorder %s4030_s18, 5 }
  0x34   : > { %s2980_s14 = sshll.u32 %s4174_s25, 7  ;;  %s3070_s19 = sshll.u32 %s4026_s17, 11 }
  0x35   : > { %p4208_p6 = pnand %p2989_p4, %p640_p5  ;;  %s5490_s8 = sld [smem:[#allocation40_spill]] }
  0x36   : > { %s546_s6 = scalar_lea.vmem [#allocation7], %s2980_s14  ;;  %s543_s3 = scalar_lea.sflag [#allocation8], %s4181_s27 }
  0x37   : > { %s5488_s0 = scalar_select %p4208_p6, 1, 0 }
  0x38   : > { %s553_s9 = sshll.u32 %s546_s6, 4  ;;  %s4033_s22 = smov [#allocation7]   ;;  %s554_s9 = int_to_ptr.vmem [resolvable:$true] %s553_s9 }
  0x39   : > { %5489 = sst [smem:[#allocation27_spill]] %s5488_s0  ;;  %s3781_s5 = scalar_lea.vmem %s554_s9, 2048 }
  0x3a   : > { %p3782_p8 = scmp.ne.s32.totalorder %s554_s9, %s3781_s5  ;;  %s3786_s21 = sshll.u32 %s4033_s22, 4  ;;  %s3787_s21 = int_to_ptr.vmem [resolvable:$false] %s3786_s21 }
  0x3b   : > { %s552_s29 = scalar_lea.hbm %s5490_s8, %s3070_s19  ;;  %s3788_s24 = scalar_lea.vmem %s3787_s21, 4096 }
  0x3c   : > { %p3784_p11 = pnand %p3782_p8, %p4194_p10  ;;  %p3789_p13 = scmp.lt.s32.totalorder %s554_s9, %s3787_s21 }
  0x3d   : > { %p3790_p0 = scmp.lt.s32.totalorder %s3788_s24, %s3781_s5 }
  0x3e   : > { %p3785_p12 = pneg %p3784_p11 }
  0x3f   : > { %p3791_p1 = por %p3790_p0, %p3789_p13 }
  0x41   : > { %p3792_p2 = pnand %p3791_p1, %p3785_p12 }
  0x43   : > { %3795 = shalt.err (!%p3792_p2)
}
  0x44   : > { %s4034_s1 = smov 128   ;;  %s4035_s6 = smov 8  }
  0x45   : > { %3517 = dma.hbm_to_vmem [thread:$0]  (!%p4176_p9), %s552_s29, 2048, %s554_s9, %s543_s3, %s4034_s1, %s4034_s1, %s4035_s6  }
  0x46   : > { %s4225_s8 = scalar_lea.hbm %s5435_s10, %s3070_s19  ;;  %s574_s5 = scalar_lea.vmem [#allocation9], %s2980_s14 }
  0x47   : > { %s581_s24 = sshll.u32 %s574_s5, 4  ;;  %s599_s16 = scalar_lea.hbm %s5436_s11, %s4184_s28  ;;  %s4227_s24 = int_to_ptr.vmem [resolvable:$true] %s581_s24 }
  0x48   : > { %s594_s18 = scalar_lea.vmem [#allocation10], %s4174_s25  ;;  %s592_s30 = scalar_lea.sflag [#allocation11], %s4181_s27 }
  0x49   : > { %s601_s23 = sshll.u32 %s594_s18, 4  ;;  %s4036_s9 = smov [#allocation10]   ;;  %s602_s23 = int_to_ptr.vmem [resolvable:$true] %s601_s23 }
  0x4a   : > { %s3809_s0 = scalar_lea.vmem %s602_s23, 16  ;;  %s3814_s19 = sshll.u32 %s4036_s9, 4  ;;  %s3815_s19 = int_to_ptr.vmem [resolvable:$false] %s3814_s19 }
  0x4b   : > { %p3810_p3 = scmp.ne.s32.totalorder %s602_s23, %s3809_s0  ;;  %s3816_s14 = scalar_lea.vmem %s3815_s19, 32 }
  0x4c   : > { %p3817_p8 = scmp.lt.s32.totalorder %s602_s23, %s3815_s19  ;;  %p3818_p11 = scmp.lt.s32.totalorder %s3816_s14, %s3809_s0 }
  0x4d   : > { %p3812_p4 = pnand %p3810_p3, %p4194_p10 }
  0x4e   : > { %p3819_p12 = por %p3818_p11, %p3817_p8 }
  0x4f   : > { %p3813_p5 = pneg %p3812_p4 }
  0x51   : > { %p3820_p13 = pnand %p3819_p12, %p3813_p5 }
  0x53   : > { %3823 = shalt.err (!%p3820_p13)
}
  0x54   : > { %3523 = dma.hbm_to_vmem [thread:$0]  (!%p4176_p9), %s599_s16, 16, %s602_s23, %s592_s30  }
  0x55   : > { %s3485_s4 = smul.u32 192, %s4174_s25  ;;  %s5491_s2 = sld [smem:[#allocation35_spill]] }
  0x56   : > { %s3486_s18 = smul.u32 3072, %s4026_s17  ;;  %s533_s21 = scalar_lea.hbm %s5432_s7, %s4184_s28 }
  0x57   : > { %s470_s0 = scalar_lea.vmem [#allocation2], %s3485_s4  ;;  %s467_s9 = scalar_lea.sflag [#allocation3], %s4174_s25 }
  0x58   : > { %s477_s20 = sshll.u32 %s470_s0, 4  ;;  %s4037_s16 = smov [#allocation2]   ;;  %s478_s20 = int_to_ptr.vmem [resolvable:$true] %s477_s20 }
  0x59   : > { %s3837_s19 = scalar_lea.vmem %s478_s20, 3072  ;;  %s3842_s23 = sshll.u32 %s4037_s16, 4  ;;  %s3843_s23 = int_to_ptr.vmem [resolvable:$false] %s3842_s23 }
  0x5a   : > { %p3838_p0 = scmp.ne.s32.totalorder %s478_s20, %s3837_s19  ;;  %s3844_s14 = scalar_lea.vmem %s3843_s23, 6144 }
  0x5b   : > { %s476_s6 = scalar_lea.hbm %s5491_s2, %s3486_s18  ;;  %p3845_p3 = scmp.lt.s32.totalorder %s478_s20, %s3843_s23 }
  0x5c   : > { %p3840_p1 = pnand %p3838_p0, %p4194_p10  ;;  %p3846_p4 = scmp.lt.s32.totalorder %s3844_s14, %s3837_s19 }
  0x5e   : > { %p3841_p2 = pneg %p3840_p1  ;;  %p3847_p5 = por %p3846_p4, %p3845_p3 }
  0x60   : > { %p3848_p8 = pnand %p3847_p5, %p3841_p2 }
  0x62   : > { %3851 = shalt.err (!%p3848_p8)
}
  0x63   : > { %s4038_s4 = smov 192   ;;  %s4039_s18 = smov 12  }
  0x64   : > { %3508 = dma.hbm_to_vmem [thread:$0]  (!%p4176_p9), %s476_s6, 3072, %s478_s20, %s467_s9, %s4038_s4, %s4038_s4, %s4039_s18  }
  0x65   : > { %s528_s29 = scalar_lea.vmem [#allocation6], %s4174_s25  ;;  %s4040_s22 = smov [#allocation6]  }
  0x66   : > { %s535_s1 = sshll.u32 %s528_s29, 4  ;;  %s3870_s5 = sshll.u32 %s4040_s22, 4  ;;  %s536_s1 = int_to_ptr.vmem [resolvable:$true] %s535_s1  ;;  %s3871_s5 = int_to_ptr.vmem [resolvable:$false] %s3870_s5 }
  0x67   : > { %s3865_s0 = scalar_lea.vmem %s536_s1, 16  ;;  %s3872_s19 = scalar_lea.vmem %s3871_s5, 32 }
  0x68   : > { %p3866_p11 = scmp.ne.s32.totalorder %s536_s1, %s3865_s0  ;;  %p3873_p0 = scmp.lt.s32.totalorder %s536_s1, %s3871_s5 }
  0x69   : > { %p3874_p1 = scmp.lt.s32.totalorder %s3872_s19, %s3865_s0 }
  0x6a   : > { %p3868_p12 = pnand %p3866_p11, %p4194_p10 }
  0x6b   : > { %p3875_p2 = por %p3874_p1, %p3873_p0 }
  0x6c   : > { %p3869_p13 = pneg %p3868_p12 }
  0x6e   : > { %p3876_p3 = pnand %p3875_p2, %p3869_p13 }
  0x70   : > { %3879 = shalt.err (!%p3876_p3)
}
  0x71   : > { %s5492_s6 = scalar_lea.sflag [#allocation5], %s4181_s27  ;;  %s3893_s16 = scalar_lea.vmem %s4227_s24, 2048 }
  0x72   : > { %3514 = dma.hbm_to_vmem [thread:$0]  (!%p4176_p9), %s533_s21, 16, %s536_s1, %s5492_s6  }
  0x73   : > { %p3894_p4 = scmp.ne.s32.totalorder %s4227_s24, %s3893_s16  ;;  %s4041_s23 = smov [#allocation9]  }
  0x74   : > { %s3898_s14 = sshll.u32 %s4041_s23, 4  ;;  %s3899_s14 = int_to_ptr.vmem [resolvable:$false] %s3898_s14 }
  0x75   : > { %p3896_p5 = pnand %p3894_p4, %p4194_p10  ;;  %s3900_s4 = scalar_lea.vmem %s3899_s14, 4096 }
  0x76   : > { %p3901_p11 = scmp.lt.s32.totalorder %s4227_s24, %s3899_s14  ;;  %p3902_p12 = scmp.lt.s32.totalorder %s3900_s4, %s3893_s16 }
  0x77   : > { %p3897_p8 = pneg %p3896_p5 }
  0x78   : > { %p3903_p13 = por %p3902_p12, %p3901_p11 }
  0x7a   : > { %p3904_p0 = pnand %p3903_p13, %p3897_p8 }
  0x7c   : > { %3907 = shalt.err (!%p3904_p0)
}
  0x7d   : > { %s4042_s18 = smov 64   ;;  %s4043_s21 = smov 4  }
  0x7e   : > { %3520 = dma.hbm_to_vmem [thread:$0]  (!%p4176_p9), %s4225_s8, 2048, %s4227_s24, %s543_s3, %s4042_s18, %s4042_s18, %s4043_s21  }
  0x7f   : > { %s616_s0 = scalar_lea.hbm %s5437_s12, %s4184_s28  ;;  %s611_s22 = scalar_lea.vmem [#allocation12], %s4174_s25 }
  0x80   : > { %s618_s5 = sshll.u32 %s611_s22, 4  ;;  %s4044_s6 = smov [#allocation12]   ;;  %s619_s5 = int_to_ptr.vmem [resolvable:$true] %s618_s5 }
  0x81   : > { %s3921_s19 = scalar_lea.vmem %s619_s5, 16  ;;  %s3926_s20 = sshll.u32 %s4044_s6, 4  ;;  %s3927_s20 = int_to_ptr.vmem [resolvable:$false] %s3926_s20 }
  0x82   : > { %p3922_p1 = scmp.ne.s32.totalorder %s619_s5, %s3921_s19  ;;  %s3928_s9 = scalar_lea.vmem %s3927_s20, 32 }
  0x83   : > { %p3929_p4 = scmp.lt.s32.totalorder %s619_s5, %s3927_s20  ;;  %p3930_p5 = scmp.lt.s32.totalorder %s3928_s9, %s3921_s19 }
  0x84   : > { %p3924_p2 = pnand %p3922_p1, %p4194_p10 }
  0x85   : > { %p3931_p8 = por %p3930_p5, %p3929_p4 }
  0x86   : > { %p3925_p3 = pneg %p3924_p2 }
  0x88   : > { %p3932_p11 = pnand %p3931_p8, %p3925_p3 }
  0x8a   : > { %3935 = shalt.err (!%p3932_p11)
}
  0x8b   : > { %3526 = dma.hbm_to_vmem [thread:$0]  (!%p4176_p9), %s616_s0, 16, %s619_s5, %s592_s30  }
  0x8c   : > { %s633_s24 = scalar_lea.hbm %s5438_s13, %s4184_s28  ;;  %s628_s16 = scalar_lea.vmem [#allocation13], %s4174_s25 }
  0x8d   : > { %s635_s23 = sshll.u32 %s628_s16, 4  ;;  %s626_s14 = scalar_lea.sflag [#allocation14], %s4174_s25  ;;  %s636_s23 = int_to_ptr.vmem [resolvable:$true] %s635_s23 }
  0x8e   : > { %s3949_s4 = scalar_lea.vmem %s636_s23, 16  ;;  %s4045_s18 = smov [#allocation13]  }
  0x8f   : > { %p3950_p12 = scmp.ne.s32.totalorder %s636_s23, %s3949_s4  ;;  %s3954_s27 = sshll.u32 %s4045_s18, 4  ;;  %s3955_s27 = int_to_ptr.vmem [resolvable:$false] %s3954_s27 }
  0x90   : > { %s3956_s21 = scalar_lea.vmem %s3955_s27, 32  ;;  %p3957_p1 = scmp.lt.s32.totalorder %s636_s23, %s3955_s27 }
  0x91   : > { %p3952_p13 = pnand %p3950_p12, %p4194_p10  ;;  %p3958_p2 = scmp.lt.s32.totalorder %s3956_s21, %s3949_s4 }
  0x93   : > { %p3953_p0 = pneg %p3952_p13  ;;  %p3959_p3 = por %p3958_p2, %p3957_p1 }
  0x95   : > { %p3960_p4 = pnand %p3959_p3, %p3953_p0 }
  0x97   : > { %3963 = shalt.err (!%p3960_p4)
}
  0x98   : > { %3529 = dma.hbm_to_vmem [thread:$0]  (!%p4176_p9), %s633_s24, 16, %s636_s23, %s626_s14  }
  0x99   : > { %644 = sbr.rel (%p4208_p6) target bundleno = 2444 (0x98c), region = 76 }
  0x9e   : > { %s5494_s25 = sld [smem:[#allocation20_spill]] }
  0xa4   : > { %s4302_s15 = sand.u32 1, %s5494_s25  }
  0xa5   : > { %s3487_s29 = smul.u32 192, %s4302_s15  ;;  %s647_s1 = scalar_lea.sflag [#allocation3], %s4302_s15 }
  0xa7   : > { %s4306_s0 = scalar_lea.vmem [#allocation2], %s3487_s29 }
  0xa8   : > { %3989 = dma.done.wait (%p4165_p7), %s647_s1, 3072  }
  0xa9   : > { %3991 = vsyncadd (%p4165_p7), %s647_s1, 4294964224  ;;  %s5496_s26 = sld [smem:[#allocation23_spill]] }
  0xaf   : > { %s5497_s22 = sadd.s32 4294967295, %s5496_s26  }
  0xb0   : > { %s655_s5 = sand.u32 1, %s5497_s22  }
  0xb1   : > { %s656_s19 = scalar_lea.sflag [#allocation5], %s655_s5 }
  0xb2   : > { %3993 = dma.done.wait (%p4165_p7), %s656_s19, 32  }
  0xb3   : > { %3995 = vsyncadd (%p4165_p7), %s656_s19, 4294967264  ;;  %s2990_s20 = sshll.u32 %s4302_s15, 7  ;;  %s672_s3 = scalar_lea.sflag [#allocation8], %s655_s5 }
  0xb4   : > { %s4321_s8 = scalar_lea.vmem [#allocation7], %s2990_s20 }
  0xb5   : > { %3997 = dma.done.wait (%p4165_p7), %s672_s3, 4096  }
  0xb6   : > { %3999 = vsyncadd (%p4165_p7), %s672_s3, 4294963200  ;;  %s4327_s24 = scalar_lea.vmem [#allocation9], %s2990_s20  ;;  %s690_s16 = scalar_lea.sflag [#allocation11], %s655_s5 }
  0xb7   : > { %4001 = dma.done.wait (%p4165_p7), %s690_s16, 32  }
  0xb8   : > { %4003 = vsyncadd (%p4165_p7), %s690_s16, 4294967264  ;;  %s706_s4 = scalar_lea.sflag [#allocation14], %s4302_s15 }
  0xb9   : > { %4005 = dma.done.wait (%p4165_p7), %s706_s4, 16  }
  0xba   : > { %4007 = vsyncadd (%p4165_p7), %s706_s4, 4294967280  ;;  %s5498_s27 = sld [smem:[#allocation22_spill]] }
  0xbb   : > { %s5499_s26 = sld [smem:[#allocation37_spill]] }
  0xbc   : > { %s5500_s28 = sld [smem:[#allocation38_spill]] }
  0xbd   : > { %s5501_s4 = sld [smem:[#allocation36_spill]] }
  0xbe   : > { %s5502_s6 = sld [smem:[#allocation41_spill]] }
  0xc0   : > { %p810_p9 = scmp.lt.s32.totalorder %s5498_s27, 3  ;;  %p2995_p7 = scmp.ne.s32.totalorder %s5498_s27, 0 }
  0xc1   : > { %s5503_s1 = sld [smem:[#allocation33_spill]] (!%p2995_p7) }
  0xc2   : > { %s4343_s21 = scalar_select %p810_p9, %s5498_s27, 3 }
  0xc3   : > { %836 = sbr.rel (%p2995_p7) target bundleno = 220 (0xdc), region = 112  ;;  %s5504_s9 = sld [smem:[#allocation42_spill]] (!%p2995_p7) }
  0xc4   : > { %s3488_s30 = smul.u32 3, %s4343_s21  ;;  %s3072_s25 = sshll.u32 %s4343_s21, 6 }
  0xc5   : > { %s4350_s22 = scalar_lea.vmem %s5499_s26, %s3072_s25  ;;  %s821_s20 = scalar_lea.vmem %s5500_s28, %s4343_s21 }
  0xc6   : > { %s4359_s18 = scalar_lea.vmem %s5501_s4, %s3488_s30  ;;  %s2994_s14 = sshll.u32 %s4343_s21, 1 }
  0xc7   : > { %s4365_s2 = scalar_lea.vmem %s5502_s6, %s2994_s14 }
  0xc8   : > { %v837_v0 = vld [vmem:[%s5503_s1] sm:$0xff]  ;;  %v838_v1 = vld [vmem:[%s5503_s1 + $0x8] sm:$0xff]  ;;  %v839_v2 = vld [vmem:[%s5503_s1 + $0x10] sm:$0xff] }
  0xc9   : > { %845 = vst [vmem:[%s5504_s9] sm:$0xff] %v837_v0  ;;  %846 = vst [vmem:[%s5504_s9 + $0x8] sm:$0xff] %v838_v1 }
  0xca   : > { %847 = vst [vmem:[%s5504_s9 + $0x10] sm:$0xff] %v839_v2 }
  0xd1   : > { %v840_v3 = vld [vmem:[%s5503_s1 + $0x18] sm:$0xff]  ;;  %v841_v4 = vld [vmem:[%s5503_s1 + $0x20] sm:$0xff]  ;;  %v842_v5 = vld [vmem:[%s5503_s1 + $0x28] sm:$0xff] }
  0xd2   : > { %848 = vst [vmem:[%s5504_s9 + $0x18] sm:$0xff] %v840_v3  ;;  %849 = vst [vmem:[%s5504_s9 + $0x20] sm:$0xff] %v841_v4 }
  0xd3   : > { %850 = vst [vmem:[%s5504_s9 + $0x28] sm:$0xff] %v842_v5 }
  0xda   : > { %v843_v6 = vld [vmem:[%s5503_s1 + $0x30] sm:$0xff]  ;;  %v844_v7 = vld [vmem:[%s5503_s1 + $0x38] sm:$0xff] }
  0xdb   : > { %851 = vst [vmem:[%s5504_s9 + $0x30] sm:$0xff] %v843_v6  ;;  %852 = vst [vmem:[%s5504_s9 + $0x38] sm:$0xff] %v844_v7 }
  0xdc PF: > { %v3588_v8 = vld [vmem:[%s4306_s0 + $0xac] ss:$12 sps:$4 sm:$0xff]   ;;  %v3590_v9 = vld [vmem:[%s4306_s0 + $0xa8] ss:$12 sps:$4 sm:$0xff]   ;;  %v5456_v10 = vmov 0   ;;  %s5505_s30 = sld [smem:[#allocation42_spill]]  ;;  %v915_v46 = vlaneseq }
  0xdd   : > { %1090 = vmatprep.mubr.bf16.mxu0 %v5456_v10  ;;  %1058 = vmatprep.subr.bf16.mxu0 %v3588_v8  ;;  %v3591_v11 = vld [vmem:[%s4306_s0 + $0x94] ss:$12 sps:$4 sm:$0xff]   ;;  %v3593_v12 = vld [vmem:[%s4306_s0 + $0x90] ss:$12 sps:$4 sm:$0xff]   ;;  %v3596_v14 = vld [vmem:[%s4306_s0 + $0x78] ss:$12 sps:$4 sm:$0xff]  }
  0xde   : > { %1059 = vmatpush1.bf16.msra.mxu0 %v3590_v9  ;;  %v3594_v13 = vld [vmem:[%s4306_s0 + $0x7c] ss:$12 sps:$4 sm:$0xff]   ;;  %v3597_v15 = vld [vmem:[%s4306_s0 + $0x64] ss:$12 sps:$4 sm:$0xff]   ;;  %v3599_v17 = vld [vmem:[%s4306_s0 + $0x60] ss:$12 sps:$4 sm:$0xff]  }
  0xdf   : > { %1060 = vmatprep.subr.bf16.mxu0 %v3591_v11  ;;  %v3600_v19 = vld [vmem:[%s4306_s0 + $0x4c] ss:$12 sps:$4 sm:$0xff]   ;;  %v3602_v21 = vld [vmem:[%s4306_s0 + $0x48] ss:$12 sps:$4 sm:$0xff]   ;;  %v3612_v22 = vld [vmem:[%s4306_s0 + $0xb0] ss:$12 sps:$4 sm:$0xff]  }
  0xe0   : > { %v3613_v23 = vld [vmem:[%s4306_s0 + $0x98] ss:$12 sps:$4 sm:$0xff]   ;;  %v3603_v24 = vld [vmem:[%s4306_s0 + $0x34] ss:$12 sps:$4 sm:$0xff]   ;;  %3233 = vmatprep.subr.bf16.mxu1 %v3612_v22  ;;  %v3605_v26 = vld [vmem:[%s4306_s0 + $0x30] ss:$12 sps:$4 sm:$0xff]  }
  0xe1   : > { %v3614_v25 = vld [vmem:[%s4306_s0 + $0x80] ss:$12 sps:$4 sm:$0xff]   ;;  %3234 = vmatpush3.bf16.msra.mxu1 %v3612_v22  ;;  %v3606_v27 = vld [vmem:[%s4306_s0 + $0x1c] ss:$12 sps:$4 sm:$0xff]   ;;  %v3608_v28 = vld [vmem:[%s4306_s0 + $0x18] ss:$12 sps:$4 sm:$0xff]  }
  0xe2   : > { %1061 = vmatpush1.bf16.msra.mxu0 %v3593_v12  ;;  %v853_v16 = vld [vmem:[%s5505_s30] sm:$0xff]  ;;  %v854_v18 = vld [vmem:[%s5505_s30 + $0x8] sm:$0xff]  ;;  %3235 = vmatprep.subr.bf16.mxu1 %v3613_v23  ;;  %v855_v31 = vld [vmem:[%s5505_s30 + $0x10] sm:$0xff]  ;;  %v5458_v44 = vmov 0.0   ;;  %vm4048_vm0 = vmmov 0   ;;  %v4474_v47 = vshrl.u32 %v915_v46, 7 }
  0xe3   : > { %1062 = vmatprep.subr.bf16.mxu0 %v3594_v13  ;;  %v861_v20 = vpack.c.bf16 %v854_v18, %v853_v16  ;;  %v3609_v29 = vld [vmem:[%s4306_s0 + $0x4] ss:$12 sps:$4 sm:$0xff]   ;;  %v3611_v30 = vld [vmem:[%s4306_s0] ss:$12 sps:$4 sm:$0xff]   ;;  %v856_v32 = vld [vmem:[%s5505_s30 + $0x18] sm:$0xff]  ;;  %s5507_s28 = sld [smem:[#allocation34_spill]] }
  0xe4   : > { %v862_v33 = vpack.c.bf16 %v856_v32, %v855_v31  ;;  %v857_v34 = vld [vmem:[%s5505_s30 + $0x20] sm:$0xff]  ;;  %v858_v35 = vld [vmem:[%s5505_s30 + $0x28] sm:$0xff]  ;;  %v859_v37 = vld [vmem:[%s5505_s30 + $0x30] sm:$0xff]  ;;  %5506 = vst [vmem:[#allocation28_spill] sm:$0xff] %v4474_v47  ;;  %v5454_v48 = vsub.s32 0, %v4474_v47  ;;  %v5455_v49 = vsub.s32 1, %v4474_v47 }
  0xe5   : > { %3249 = vmatprep.mubr.bf16.mxu1 %v861_v20  ;;  %3236 = vmatpush3.bf16.msra.mxu1 %v3613_v23  ;;  %v863_v36 = vpack.c.bf16 %v858_v35, %v857_v34  ;;  %v860_v38 = vld [vmem:[%s5505_s30 + $0x38] sm:$0xff]  ;;  %v3615_v40 = vld [vmem:[%s4306_s0 + $0x68] ss:$12 sps:$4 sm:$0xff]   ;;  %v3618_v43 = vld [vmem:[%s4306_s0 + $0x20] ss:$12 sps:$4 sm:$0xff]   ;;  %s5536_s3 = scalar_lea.vmem [#allocation6], %s4302_s15 }
  0xe6   : > { %1063 = vmatpush1.bf16.msra.mxu0 %v3596_v14  ;;  %3237 = vmatprep.subr.bf16.mxu1 %v3614_v25  ;;  %v864_v39 = vpack.c.bf16 %v860_v38, %v859_v37  ;;  %v3616_v41 = vld [vmem:[%s4306_s0 + $0x50] ss:$12 sps:$4 sm:$0xff]   ;;  %v3617_v42 = vld [vmem:[%s4306_s0 + $0x38] ss:$12 sps:$4 sm:$0xff]   ;;  %v3619_v45 = vld [vmem:[%s4306_s0 + $0x8] ss:$12 sps:$4 sm:$0xff]  }
  0xe7   : > { %1064 = vmatprep.subr.bf16.mxu0 %v3597_v15  ;;  %v4479_v50 = vld [vmem:[%s4359_s18] sm:$0x7]  ;;  %s5542_s6 = scalar_lea.vmem [#allocation13], %s4302_s15 }
  0xe8   : > { %v918_v52 = vrot.slane %v4479_v50, %v5454_v48  ;;  %v4487_v53 = vrot.slane %v4479_v50, %v5455_v49 }
  0xe9   : > { %3238 = vmatpush3.bf16.msra.mxu1 %v3614_v25  ;;  %v4499_v60 = vld [vmem:[%s5507_s28 + $0x70] sm:$0xff]  ;;  %v4504_v61 = vld [vmem:[%s5507_s28 + $0x78] sm:$0xff]  ;;  %v4523_v8 = vld [vmem:[%s5507_s28 + $0x68] sm:$0xff] }
  0xea   : > { %1065 = vmatpush1.bf16.msra.mxu0 %v3599_v17  ;;  %3239 = vmatprep.subr.bf16.mxu1 %v3615_v40  ;;  %v4531_v12 = vld [vmem:[%s5507_s28 + $0x60] sm:$0xff] }
  0xeb   : > { %1066 = vmatprep.subr.bf16.mxu0 %v3600_v19 }
  0xed   : > { %3240 = vmatpush3.bf16.msra.mxu1 %v3615_v40 }
  0xee   : > { %1067 = vmatpush1.bf16.msra.mxu0 %v3602_v21  ;;  %3241 = vmatprep.subr.bf16.mxu1 %v3616_v41 }
  0xef   : > { %1068 = vmatprep.subr.bf16.mxu0 %v3603_v24  ;;  %v4553_v24 = vld [vmem:[%s5507_s28 + $0x58] sm:$0xff] }
  0xf1   : > { %3242 = vmatpush3.bf16.msra.mxu1 %v3616_v41 }
  0xf2   : > { %1069 = vmatpush1.bf16.msra.mxu0 %v3605_v26  ;;  %3243 = vmatprep.subr.bf16.mxu1 %v3617_v42 }
  0xf3   : > { %1070 = vmatprep.subr.bf16.mxu0 %v3606_v27 }
  0xf5   : > { %3244 = vmatpush3.bf16.msra.mxu1 %v3617_v42 }
  0xf6   : > { %1071 = vmatpush1.bf16.msra.mxu0 %v3608_v28  ;;  %3245 = vmatprep.subr.bf16.mxu1 %v3618_v43 }
  0xf7   : > { %1072 = vmatprep.subr.bf16.mxu0 %v3609_v29  ;;  %v4566_v29 = vld [vmem:[%s5507_s28 + $0x50] sm:$0xff] }
  0xf9   : > { %3246 = vmatpush3.bf16.msra.mxu1 %v3618_v43 }
  0xfa   : > { %1073 = vmatpush1.bf16.msra.mxu0 %v3611_v30  ;;  %3247 = vmatprep.subr.bf16.mxu1 %v3619_v45 }
  0xfb   : > { %3257 = vmatprep.subr.bf16.mxu0 %v5458_v44 }
  0xfd   : > { %1091 = vmatmul.mubr.bf16.vlgmr.msra.gmra.mxu0 %v861_v20  ;;  %3248 = vmatpush3.bf16.msra.mxu1 %v3619_v45  ;;  %v4596_v45 = vld [vmem:[%s5507_s28 + $0x40] sm:$0xff] }
  0xfe   : > { %1100 = vmatprep.mubr.bf16.mxu0 %v5456_v10  ;;  %3277 = vmatprep.subr.bf16.mxu1 %v5458_v44 }
 0x100   : > { %3250 = vmatmul.mubr.bf16.vlgmr.msra.gmra.mxu1 %v862_v33 }
 0x101   : > { %3253 = vmatprep.mubr.bf16.mxu1 %v863_v36 }
 0x105   : > { %1101 = vmatmul.mubr.bf16.gmra.mxu0 %v862_v33 }
 0x106   : > { %1110 = vmatprep.mubr.bf16.mxu0 %v5456_v10 }
 0x108   : > { %3254 = vmatmul.mubr.bf16.gmra.mxu1 %v864_v39 }
 0x109   : > { %3293 = vmatprep.mubr.msk.bf16.mxu1 %vm4048_vm0, %v5458_v44 }
 0x10d   : > { %1111 = vmatmul.mubr.bf16.gmra.mxu0 %v863_v36 }
 0x10e   : > { %1120 = vmatprep.mubr.bf16.mxu0 %v5456_v10 }
 0x115   : > { %1121 = vmatmul.mubr.bf16.gmra.mxu0 %v864_v39  ;;  %v4583_v39 = vld [vmem:[%s5507_s28 + $0x48] sm:$0xff] }
 0x116   : > { %3273 = vmatprep.mubr.msk.bf16.mxu0 %vm4048_vm0, %v5458_v44 }
 0x1bd   : > { %v1092_v51 = vpop.f32.mrf.mxu0 }
 0x1be   : > { %v4489_v56 = vadd.f32 %v1092_v51, %v918_v52 }
 0x1bf   : > { %v1094_v54 = vpop.f32.mrf.mxu0 }
 0x1c0   : > { %v4492_v57 = vadd.f32 %v1094_v54, %v4487_v53 }
 0x1c1   : > { %v1096_v55 = vpop.f32.mrf.mxu0 }
 0x1c2   : > { %v4494_v58 = vadd.f32 %v1096_v55, %v918_v52  ;;  %v1210_v1 = vmul.f32 %v4492_v57, %v4499_v60  ;;  %v1208_v18 = vmul.f32 %v4492_v57, %v4531_v12  ;;  %v1206_v34 = vmul.f32 %v4492_v57, %v4566_v29 }
 0x1c3   : > { %v1098_v59 = vpop.f32.mrf.mxu0  ;;  %v1204_v54 = vmul.f32 %v4492_v57, %v4596_v45 }
 0x1c4   : > { %v1388_v62 = vpack.c.bf16 %v4494_v58, %v4489_v56  ;;  %v4509_v63 = vadd.f32 %v1098_v59, %v4487_v53  ;;  %v4607_v59 = vld [vmem:[%s5507_s28 + $0x38] sm:$0xff] }
 0x1c5   : > { %v1102_v0 = vpop.f32.mrf.mxu0 }
 0x1c6   : > { %v1211_v2 = vmul.f32 %v4509_v63, %v4504_v61  ;;  %v4515_v4 = vadd.f32 %v1102_v0, %v918_v52  ;;  %v1209_v15 = vmul.f32 %v4509_v63, %v4523_v8  ;;  %v1207_v31 = vmul.f32 %v4509_v63, %v4553_v24 }
 0x1c7   : > { %v1104_v3 = vpop.f32.mrf.mxu0  ;;  %v1205_v46 = vmul.f32 %v4509_v63, %v4583_v39 }
 0x1c8   : > { %v4518_v5 = vadd.f32 %v1104_v3, %v4487_v53  ;;  %v1267_v6 = vpack.c.bf16 %v1211_v2, %v1210_v1  ;;  %v1266_v22 = vpack.c.bf16 %v1209_v15, %v1208_v18  ;;  %v1265_v38 = vpack.c.bf16 %v1207_v31, %v1206_v34  ;;  %v4618_v2 = vld [vmem:[%s5507_s28 + $0x30] sm:$0xff]  ;;  %v4627_v15 = vld [vmem:[%s5507_s28 + $0x28] sm:$0xff]  ;;  %v4638_v18 = vld [vmem:[%s5507_s28 + $0x20] sm:$0xff] }
 0x1c9   : > { %v1106_v7 = vpop.f32.mrf.mxu0  ;;  %v1264_v55 = vpack.c.bf16 %v1205_v46, %v1204_v54  ;;  %v1203_v3 = vmul.f32 %v4509_v63, %v4607_v59 }
 0x1ca   : > { %v4525_v9 = vadd.f32 %v1106_v7, %v918_v52  ;;  %3258 = vmatpush3.bf16.xpose.msra.mxu0 %v1267_v6  ;;  %v1226_v16 = vmul.f32 %v4518_v5, %v4499_v60  ;;  %v1224_v26 = vmul.f32 %v4518_v5, %v4531_v12  ;;  %v1222_v41 = vmul.f32 %v4518_v5, %v4566_v29 }
 0x1cb   : > { %v1108_v11 = vpop.f32.mrf.mxu0  ;;  %3259 = vmatprep.subr.bf16.mxu0 %v5458_v44  ;;  %v1220_v0 = vmul.f32 %v4518_v5, %v4596_v45  ;;  %v1202_v6 = vmul.f32 %v4492_v57, %v4618_v2 }
 0x1cc   : > { %v1389_v13 = vpack.c.bf16 %v4525_v9, %v4515_v4  ;;  %v4536_v14 = vadd.f32 %v1108_v11, %v4487_v53 }
 0x1cd   : > { %v1112_v17 = vpop.f32.mrf.mxu0  ;;  %v1263_v11 = vpack.c.bf16 %v1203_v3, %v1202_v6 }
 0x1ce   : > { %v1227_v19 = vmul.f32 %v4536_v14, %v4504_v61  ;;  %v4546_v20 = vadd.f32 %v1112_v17, %v918_v52  ;;  %v1225_v27 = vmul.f32 %v4536_v14, %v4523_v8  ;;  %v1223_v42 = vmul.f32 %v4536_v14, %v4553_v24 }
 0x1cf   : > { %v4548_v21 = vpop.f32.mrf.mxu0  ;;  %v1221_v1 = vmul.f32 %v4536_v14, %v4583_v39  ;;  %v1219_v17 = vmul.f32 %v4536_v14, %v4607_v59  ;;  %v1217_v31 = vmul.f32 %v4536_v14, %v4627_v15 }
 0x1d0   : > { %v1275_v23 = vpack.c.bf16 %v1227_v19, %v1226_v16  ;;  %v1274_v35 = vpack.c.bf16 %v1225_v27, %v1224_v26  ;;  %v1218_v16 = vmul.f32 %v4518_v5, %v4618_v2  ;;  %v1201_v19 = vmul.f32 %v4509_v63, %v4627_v15  ;;  %v4647_v26 = vld [vmem:[%s5507_s28 + $0x18] sm:$0xff] }
 0x1d1   : > { %v1116_v25 = vpop.f32.mrf.mxu0  ;;  %v1272_v7 = vpack.c.bf16 %v1221_v1, %v1220_v0  ;;  %v1216_v27 = vmul.f32 %v4518_v5, %v4638_v18  ;;  %v1199_v34 = vmul.f32 %v4509_v63, %v4647_v26  ;;  %v4686_v0 = vadd.f32 %v4548_v21, %v4487_v53 }
 0x1d2   : > { %3260 = vmatpush3.bf16.xpose.msra.mxu0 %v1266_v22  ;;  %3278 = vmatpush3.bf16.xpose.msra.mxu1 %v1275_v23  ;;  %v4559_v28 = vadd.f32 %v1116_v25, %v918_v52  ;;  %v1200_v22 = vmul.f32 %v4492_v57, %v4638_v18  ;;  %v1271_v23 = vpack.c.bf16 %v1219_v17, %v1218_v16 }
 0x1d3   : > { %3261 = vmatprep.subr.bf16.mxu0 %v5458_v44  ;;  %3279 = vmatprep.subr.bf16.mxu1 %v5458_v44  ;;  %v4568_v30 = vpop.f32.mrf.mxu0 }
 0x1d4   : > { %v1390_v32 = vpack.c.bf16 %v4559_v28, %v4546_v20  ;;  %v1262_v25 = vpack.c.bf16 %v1201_v19, %v1200_v22  ;;  %v4690_v1 = vadd.f32 %v4568_v30, %v4487_v53 }
 0x1d5   : > { %v1122_v33 = vpop.f32.mrf.mxu0 }
 0x1d6   : > { %v4576_v36 = vadd.f32 %v1122_v33, %v918_v52  ;;  %v4658_v33 = vld [vmem:[%s5507_s28 + $0x10] sm:$0xff]  ;;  %v1243_v30 = vmul.f32 %v4690_v1, %v4504_v61  ;;  %v1239_v4 = vmul.f32 %v4690_v1, %v4553_v24 }
 0x1d7   : > { %v4578_v37 = vpop.f32.mrf.mxu0  ;;  %v1214_v54 = vmul.f32 %v4518_v5, %v4658_v33 }
 0x1d9   : > { %v1126_v40 = vpop.f32.mrf.mxu0 }
 0x1da   : > { %3262 = vmatpush3.bf16.xpose.msra.mxu0 %v1265_v38  ;;  %3280 = vmatpush3.bf16.xpose.msra.mxu1 %v1274_v35  ;;  %v4589_v43 = vadd.f32 %v1126_v40, %v918_v52  ;;  %v1273_v52 = vpack.c.bf16 %v1223_v42, %v1222_v41  ;;  %v1198_v35 = vmul.f32 %v4492_v57, %v4658_v33  ;;  %v4667_v41 = vld [vmem:[%s5507_s28 + $0x8] sm:$0xff]  ;;  %v4674_v42 = vld [vmem:[%s5507_s28] sm:$0xff] }
 0x1db   : > { %3263 = vmatprep.subr.bf16.mxu0 %v5458_v44  ;;  %3281 = vmatprep.subr.bf16.mxu1 %v5458_v44  ;;  %v1270_v38 = vpack.c.bf16 %v1217_v31, %v1216_v27  ;;  %5508 = vst [vmem:[#allocation29_spill] sm:$0xff] %v4674_v42  ;;  %v1197_v46 = vmul.f32 %v4509_v63, %v4667_v41  ;;  %v1128_v63 = vpop.f32.mrf.mxu0 }
 0x1dc   : > { %v1391_v51 = vpack.c.bf16 %v4589_v43, %v4576_v36  ;;  %v1261_v40 = vpack.c.bf16 %v1199_v34, %v1198_v35  ;;  %v1213_v21 = vmul.f32 %v4536_v14, %v4667_v41  ;;  %v4707_v16 = vadd.f32 %v1128_v63, %v4487_v53 }
 0x1de   : > { %v1255_v35 = vmul.f32 %v4707_v16, %v4553_v24 }
 0x1e2   : > { %3264 = vmatpush3.bf16.xpose.msra.mxu0 %v1264_v55  ;;  %3282 = vmatpush3.bf16.xpose.msra.mxu1 %v1273_v52  ;;  %v1215_v52 = vmul.f32 %v4536_v14, %v4647_v26  ;;  %v1196_v55 = vmul.f32 %v4492_v57, %v4674_v42  ;;  %v1212_v57 = vmul.f32 %v4518_v5, %v4674_v42 }
 0x1e3   : > { %3265 = vmatprep.subr.bf16.mxu0 %v5458_v44  ;;  %3283 = vmatprep.subr.bf16.mxu1 %v5458_v44  ;;  %v1259_v14 = vmul.f32 %v4707_v16, %v4504_v61 }
 0x1e4   : > { %v1260_v3 = vpack.c.bf16 %v1197_v46, %v1196_v55  ;;  %v1269_v6 = vpack.c.bf16 %v1215_v52, %v1214_v54  ;;  %v1268_v17 = vpack.c.bf16 %v1213_v21, %v1212_v57  ;;  %v1237_v46 = vmul.f32 %v4690_v1, %v4583_v39 }
 0x1e5   : > { %v1253_v21 = vmul.f32 %v4707_v16, %v4583_v39 }
 0x1ea   : > { %3266 = vmatpush3.bf16.xpose.msra.mxu0 %v1263_v11  ;;  %3284 = vmatpush3.bf16.xpose.msra.mxu1 %v1272_v7  ;;  %v1242_v7 = vmul.f32 %v4686_v0, %v4499_v60  ;;  %v4704_v11 = vadd.f32 %v4578_v37, %v4487_v53  ;;  %v1240_v53 = vmul.f32 %v4686_v0, %v4531_v12 }
 0x1eb   : > { %3267 = vmatprep.subr.bf16.mxu0 %v5458_v44  ;;  %3285 = vmatprep.subr.bf16.mxu1 %v5458_v44  ;;  %v1241_v37 = vmul.f32 %v4690_v1, %v4523_v8 }
 0x1ec   : > { %v1283_v19 = vpack.c.bf16 %v1243_v30, %v1242_v7  ;;  %v1258_v5 = vmul.f32 %v4704_v11, %v4499_v60  ;;  %v1256_v22 = vmul.f32 %v4704_v11, %v4531_v12  ;;  %v1254_v34 = vmul.f32 %v4704_v11, %v4566_v29 }
 0x1ed   : > { %v1282_v58 = vpack.c.bf16 %v1241_v37, %v1240_v53  ;;  %v1252_v57 = vmul.f32 %v4704_v11, %v4596_v45  ;;  %v1235_v7 = vmul.f32 %v4690_v1, %v4607_v59  ;;  %v1233_v53 = vmul.f32 %v4690_v1, %v4627_v15 }
 0x1ee   : > { %v1291_v56 = vpack.c.bf16 %v1259_v14, %v1258_v5  ;;  %v1289_v52 = vpack.c.bf16 %v1255_v35, %v1254_v34  ;;  %v1251_v5 = vmul.f32 %v4707_v16, %v4607_v59  ;;  %v1232_v14 = vmul.f32 %v4686_v0, %v4638_v18 }
 0x1ef   : > { %v1288_v30 = vpack.c.bf16 %v1253_v21, %v1252_v57  ;;  %v1229_v34 = vmul.f32 %v4690_v1, %v4667_v41  ;;  %v1246_v35 = vmul.f32 %v4704_v11, %v4658_v33 }
 0x1f2   : > { %3268 = vmatpush3.bf16.xpose.msra.mxu0 %v1262_v25  ;;  %3286 = vmatpush3.bf16.xpose.msra.mxu1 %v1271_v23  ;;  %v1257_v23 = vmul.f32 %v4707_v16, %v4523_v8  ;;  %v1238_v25 = vmul.f32 %v4686_v0, %v4566_v29 }
 0x1f3   : > { %3269 = vmatprep.subr.bf16.mxu0 %v5458_v44  ;;  %3287 = vmatprep.subr.bf16.mxu1 %v5458_v44 }
 0x1f4   : > { %v1281_v27 = vpack.c.bf16 %v1239_v4, %v1238_v25  ;;  %v1231_v25 = vmul.f32 %v4690_v1, %v4647_v26 }
 0x1fa   : > { %3270 = vmatpush3.bf16.xpose.msra.mxu0 %v1261_v40  ;;  %3288 = vmatpush3.bf16.xpose.msra.mxu1 %v1270_v38  ;;  %v925_v38 = vsub.s32 2, %v4474_v47  ;;  %v1236_v40 = vmul.f32 %v4686_v0, %v4596_v45 }
 0x1fb   : > { %3271 = vmatprep.subr.bf16.mxu0 %v5458_v44  ;;  %3289 = vmatprep.subr.bf16.mxu1 %v5458_v44 }
 0x1fc   : > { %v4755_v55 = vrot.slane %v4479_v50, %v925_v38  ;;  %v1234_v50 = vmul.f32 %v4686_v0, %v4618_v2  ;;  %v1247_v38 = vmul.f32 %v4707_v16, %v4647_v26 }
 0x202   : > { %3272 = vmatpush3.bf16.xpose.msra.mxu0 %v1260_v3  ;;  %3290 = vmatpush3.bf16.xpose.msra.mxu1 %v1269_v6  ;;  %v1280_v6 = vpack.c.bf16 %v1237_v46, %v1236_v40 }
 0x203   : > { %3291 = vmatprep.subr.bf16.mxu1 %v5458_v44  ;;  %3297 = vmatprep.subr.bf16.mxu0 %v5458_v44 }
 0x209   : > { %3274 = vmatmul.mubr.bf16.vlgmr.msra.gmra.mxu0 %v1388_v62  ;;  %v4727_v62 = vpop.f32.mrf.mxu1 }
 0x20a   : > { %3292 = vmatpush3.bf16.xpose.msra.mxu1 %v1268_v17  ;;  %3298 = vmatpush3.bf16.xpose.msra.mxu0 %v1283_v19  ;;  %v1279_v17 = vpack.c.bf16 %v1235_v7, %v1234_v50  ;;  %v1250_v19 = vmul.f32 %v4704_v11, %v4618_v2 }
 0x20b   : > { %3299 = vmatprep.subr.bf16.mxu0 %v5458_v44  ;;  %3317 = vmatprep.subr.bf16.mxu1 %v5458_v44  ;;  %v1165_v9 = vpop.f32.mrf.mxu1 }
 0x20c   : > { %3313 = vmatprep.mubr.msk.bf16.mxu0 %vm4048_vm0, %v5458_v44  ;;  %v1287_v37 = vpack.c.bf16 %v1251_v5, %v1250_v19  ;;  %v4801_v40 = vadd.f32 %v1165_v9, %v4755_v55  ;;  %v1244_v9 = vmul.f32 %v4704_v11, %v4674_v42 }
 0x20d   : > { %v4741_v31 = vpop.f32.mrf.mxu1 }
 0x20e   : > { %v4822_v57 = vadd.f32 %v4741_v31, %v4755_v55  ;;  %v1304_v50 = vmul.f32 %v4801_v40, %v4531_v12  ;;  %v1300_v5 = vmul.f32 %v4801_v40, %v4596_v45 }
 0x20f   : > { %v1168_v54 = vpop.f32.mrf.mxu1 }
 0x210   : > { %v4804_v46 = vadd.f32 %v1168_v54, %v4755_v55  ;;  %v1245_v54 = vmul.f32 %v4707_v16, %v4667_v41  ;;  %v1317_v43 = vmul.f32 %v4822_v57, %v4583_v39 }
 0x211   : > { %3294 = vmatmul.mubr.bf16.vlgmr.msra.gmra.mxu1 %v1389_v13  ;;  %v1290_v13 = vpack.c.bf16 %v1257_v23, %v1256_v22  ;;  %v3255_v3 = vpop.f32.mrf.mxu1  ;;  %v1249_v22 = vmul.f32 %v4707_v16, %v4627_v15  ;;  %v1230_v23 = vmul.f32 %v4686_v0, %v4658_v33  ;;  %v1302_v16 = vmul.f32 %v4801_v40, %v4566_v29 }
 0x212   : > { %3300 = vmatpush3.bf16.xpose.msra.mxu0 %v1282_v58  ;;  %3318 = vmatpush3.bf16.xpose.msra.mxu1 %v1291_v56  ;;  %v4758_v63 = vadd.f32 %v3255_v3, %v4755_v55  ;;  %v1278_v56 = vpack.c.bf16 %v1233_v53, %v1232_v14  ;;  %v1248_v58 = vmul.f32 %v4704_v11, %v4638_v18 }
 0x213   : > { %3301 = vmatprep.subr.bf16.mxu0 %v5458_v44  ;;  %3319 = vmatprep.subr.bf16.mxu1 %v5458_v44  ;;  %v1285_v3 = vpack.c.bf16 %v1247_v38, %v1246_v35  ;;  %v1307_v1 = vmul.f32 %v4804_v46, %v4504_v61  ;;  %v1305_v7 = vmul.f32 %v4804_v46, %v4523_v8  ;;  %v1181_v19 = vpop.f32.mrf.mxu1 }
 0x214   : > { %3333 = vmatprep.mubr.msk.bf16.mxu1 %vm4048_vm0, %v5458_v44  ;;  %v1286_v4 = vpack.c.bf16 %v1249_v22, %v1248_v58  ;;  %v4842_v20 = vadd.f32 %v1181_v19, %v4755_v55  ;;  %v1301_v58 = vmul.f32 %v4804_v46, %v4583_v39  ;;  %v1297_v38 = vmul.f32 %v4804_v46, %v4627_v15 }
 0x215   : > { %v1362_v31 = vpack.c.bf16 %v1305_v7, %v1304_v50  ;;  %v3256_v28 = vpop.f32.mrf.mxu1  ;;  %v1313_v7 = vmul.f32 %v4822_v57, %v4627_v15  ;;  %v5058_v10 = vmul.f32 %v4758_v63, %v4674_v42 }
 0x216   : > { %v4851_v14 = vadd.f32 %v3256_v28, %v4755_v55  ;;  %v1309_v28 = vmul.f32 %v4822_v57, %v4667_v41 }
 0x217   : > { %5510 = vst [vmem:[#allocation31_spill] sm:$0xff] %v5058_v10 }
 0x218   : > { %v5054_v49 = vmul.f32 %v4851_v14, %v4647_v26 }
 0x21a   : > { %3302 = vmatpush3.bf16.xpose.msra.mxu0 %v1281_v27  ;;  %3320 = vmatpush3.bf16.xpose.msra.mxu1 %v1290_v13  ;;  %v1277_v13 = vpack.c.bf16 %v1231_v25, %v1230_v23  ;;  %v1228_v27 = vmul.f32 %v4686_v0, %v4674_v42  ;;  %v1306_v0 = vmul.f32 %v4801_v40, %v4499_v60 }
 0x21b   : > { %3303 = vmatprep.subr.bf16.mxu0 %v5458_v44  ;;  %3321 = vmatprep.subr.bf16.mxu1 %v5458_v44  ;;  %v1319_v23 = vmul.f32 %v4822_v57, %v4553_v24  ;;  %v1298_v25 = vmul.f32 %v4801_v40, %v4618_v2 }
 0x21c   : > { %v1363_v21 = vpack.c.bf16 %v1307_v1, %v1306_v0  ;;  %v1294_v0 = vmul.f32 %v4801_v40, %v4658_v33 }
 0x222   : > { %3304 = vmatpush3.bf16.xpose.msra.mxu0 %v1280_v6  ;;  %3322 = vmatpush3.bf16.xpose.msra.mxu1 %v1289_v52  ;;  %v1276_v52 = vpack.c.bf16 %v1229_v34, %v1228_v27  ;;  %v4818_v6 = vadd.f32 %v4727_v62, %v4755_v55  ;;  %v1323_v62 = vmul.f32 %v4822_v57, %v4504_v61 }
 0x223   : > { %3305 = vmatprep.subr.bf16.mxu0 %v5458_v44  ;;  %3323 = vmatprep.subr.bf16.mxu1 %v5458_v44  ;;  %v1299_v27 = vmul.f32 %v4804_v46, %v4607_v59 }
 0x224   : > { %v1322_v11 = vmul.f32 %v4818_v6, %v4499_v60  ;;  %v1318_v22 = vmul.f32 %v4818_v6, %v4566_v29  ;;  %v1316_v36 = vmul.f32 %v4818_v6, %v4596_v45  ;;  %v1312_v50 = vmul.f32 %v4818_v6, %v4638_v18 }
 0x225   : > { %v1359_v35 = vpack.c.bf16 %v1299_v27, %v1298_v25 }
 0x226   : > { %v1371_v53 = vpack.c.bf16 %v1323_v62, %v1322_v11  ;;  %v1369_v34 = vpack.c.bf16 %v1319_v23, %v1318_v22  ;;  %v1368_v1 = vpack.c.bf16 %v1317_v43, %v1316_v36  ;;  %v1292_v11 = vmul.f32 %v4801_v40, %v4674_v42 }
 0x227   : > { %v1310_v62 = vmul.f32 %v4818_v6, %v4658_v33  ;;  %v4941_v22 = vmul.f32 %v4842_v20, %v4596_v45 }
 0x22a   : > { %3306 = vmatpush3.bf16.xpose.msra.mxu0 %v1279_v17  ;;  %3324 = vmatpush3.bf16.xpose.msra.mxu1 %v1288_v30  ;;  %v1284_v30 = vpack.c.bf16 %v1245_v54, %v1244_v9  ;;  %v1303_v17 = vmul.f32 %v4804_v46, %v4553_v24  ;;  %v1295_v54 = vmul.f32 %v4804_v46, %v4647_v26 }
 0x22b   : > { %3307 = vmatprep.subr.bf16.mxu0 %v5458_v44  ;;  %3325 = vmatprep.subr.bf16.mxu1 %v5458_v44 }
 0x232   : > { %3308 = vmatpush3.bf16.xpose.msra.mxu0 %v1278_v56  ;;  %3326 = vmatpush3.bf16.xpose.msra.mxu1 %v1287_v37  ;;  %v1321_v37 = vmul.f32 %v4822_v57, %v4523_v8  ;;  %v1361_v56 = vpack.c.bf16 %v1303_v17, %v1302_v16  ;;  %v1293_v16 = vmul.f32 %v4804_v46, %v4667_v41 }
 0x233   : > { %3309 = vmatprep.subr.bf16.mxu0 %v5458_v44  ;;  %3327 = vmatprep.subr.bf16.mxu1 %v5458_v44  ;;  %v1311_v17 = vmul.f32 %v4822_v57, %v4647_v26  ;;  %v1308_v46 = vmul.f32 %v4818_v6, %v4674_v42 }
 0x234   : > { %v1356_v19 = vpack.c.bf16 %v1293_v16, %v1292_v11  ;;  %v5014_v16 = vmul.f32 %v4851_v14, %v4553_v24 }
 0x23a   : > { %3310 = vmatpush3.bf16.xpose.msra.mxu0 %v1277_v13  ;;  %3328 = vmatpush3.bf16.xpose.msra.mxu1 %v1286_v4  ;;  %v1360_v13 = vpack.c.bf16 %v1301_v58, %v1300_v5  ;;  %v1184_v5 = vpop.f32.mrf.mxu1  ;;  %v4934_v58 = vmul.f32 %v4842_v20, %v4566_v29 }
 0x23b   : > { %3311 = vmatprep.subr.bf16.mxu0 %v5458_v44  ;;  %3329 = vmatprep.subr.bf16.mxu1 %v5458_v44 }
 0x242   : > { %3312 = vmatpush3.bf16.xpose.msra.mxu0 %v1276_v52  ;;  %3330 = vmatpush3.bf16.xpose.msra.mxu1 %v1285_v3  ;;  %v1314_v52 = vmul.f32 %v4818_v6, %v4618_v2  ;;  %v1315_v3 = vmul.f32 %v4822_v57, %v4607_v59 }
 0x243   : > { %3331 = vmatprep.subr.bf16.mxu1 %v5458_v44  ;;  %3337 = vmatprep.subr.bf16.mxu0 %v5458_v44 }
 0x249   : > { %3314 = vmatmul.mubr.bf16.vlgmr.msra.gmra.mxu0 %v1390_v32  ;;  %v1320_v32 = vmul.f32 %v4818_v6, %v4531_v12  ;;  %v4920_v6 = vmul.f32 %v4842_v20, %v4499_v60 }
 0x24a   : > { %3332 = vmatpush3.bf16.xpose.msra.mxu1 %v1284_v30  ;;  %3338 = vmatpush3.bf16.msra.mxu0 %v1363_v21  ;;  %v1367_v21 = vpack.c.bf16 %v1315_v3, %v1314_v52  ;;  %v1357_v30 = vpack.c.bf16 %v1295_v54, %v1294_v0  ;;  %v4979_v3 = vmul.f32 %v4842_v20, %v4674_v42 }
 0x24b   : > { %3357 = vmatprep.subr.bf16.mxu1 %v5458_v44  ;;  %3339 = vmatprep.subr.bf16.mxu0 %v5458_v44  ;;  %v1370_v4 = vpack.c.bf16 %v1321_v37, %v1320_v32  ;;  %v1364_v32 = vpack.c.bf16 %v1309_v28, %v1308_v46  ;;  %v4927_v37 = vmul.f32 %v4842_v20, %v4531_v12 }
 0x24c   : > { %3353 = vmatprep.mubr.msk.bf16.mxu0 %vm4048_vm0, %v5458_v44  ;;  %v4992_v54 = vmul.f32 %v4851_v14, %v4504_v61  ;;  %v5038_v28 = vmul.f32 %v4758_v63, %v4638_v18 }
 0x24e   : > { %3340 = vmatpush3.bf16.msra.mxu0 %v1362_v31  ;;  %v1366_v31 = vpack.c.bf16 %v1313_v7, %v1312_v50  ;;  %v5002_v50 = vmul.f32 %v4851_v14, %v4523_v8  ;;  %v5006_v7 = vmul.f32 %v4758_v63, %v4566_v29 }
 0x24f   : > { %3341 = vmatprep.subr.bf16.mxu0 %v5458_v44 }
 0x251   : > { %3334 = vmatmul.mubr.bf16.vlgmr.msra.gmra.mxu1 %v1391_v51  ;;  %v1296_v51 = vmul.f32 %v4801_v40, %v4638_v18  ;;  %v1365_v40 = vpack.c.bf16 %v1311_v17, %v1310_v62  ;;  %v5018_v62 = vmul.f32 %v4758_v63, %v4596_v45  ;;  %v5024_v17 = vmul.f32 %v4851_v14, %v4583_v39 }
 0x252   : > { %3358 = vmatpush3.bf16.msra.mxu1 %v1371_v53  ;;  %3342 = vmatpush3.bf16.msra.mxu0 %v1361_v56  ;;  %v1185_v53 = vadd.f32 %v1184_v5, %v4755_v55  ;;  %v5046_v5 = vmul.f32 %v4758_v63, %v4658_v33 }
 0x253   : > { %3359 = vmatprep.subr.bf16.mxu1 %v5458_v44  ;;  %3343 = vmatprep.subr.bf16.mxu0 %v5458_v44  ;;  %v1358_v9 = vpack.c.bf16 %v1297_v38, %v1296_v51  ;;  %v4963_v51 = vmul.f32 %v4842_v20, %v4638_v18  ;;  %v4972_v38 = vmul.f32 %v4842_v20, %v4658_v33 }
 0x254   : > { %3373 = vmatprep.mubr.msk.bf16.mxu1 %vm4048_vm0, %v5458_v44  ;;  %v4923_v57 = vmul.f32 %v1185_v53, %v4504_v61  ;;  %v4930_v56 = vmul.f32 %v1185_v53, %v4523_v8  ;;  %v4937_v55 = vmul.f32 %v1185_v53, %v4553_v24  ;;  %v4944_v23 = vmul.f32 %v1185_v53, %v4583_v39 }
 0x255   : > { %v4955_v27 = vmul.f32 %v1185_v53, %v4607_v59  ;;  %v4975_v52 = vmul.f32 %v1185_v53, %v4647_v26  ;;  %5509 = vst [vmem:[#allocation30_spill] sm:$0xff] %v5046_v5  ;;  %v5513_v5 = vmov 0.0  }
 0x256   : > { %3360 = vmatpush3.bf16.msra.mxu1 %v1370_v4  ;;  %3344 = vmatpush3.bf16.msra.mxu0 %v1360_v13  ;;  %v4952_v13 = vmul.f32 %v4842_v20, %v4618_v2  ;;  %v4998_v20 = vmul.f32 %v4758_v63, %v4531_v12 }
 0x257   : > { %3361 = vmatprep.subr.bf16.mxu1 %v5458_v44  ;;  %3345 = vmatprep.subr.bf16.mxu0 %v5458_v44 }
 0x25a   : > { %3362 = vmatpush3.bf16.msra.mxu1 %v1369_v34  ;;  %3346 = vmatpush3.bf16.msra.mxu0 %v1359_v35  ;;  %v4966_v34 = vmul.f32 %v1185_v53, %v4627_v15 }
 0x25b   : > { %3363 = vmatprep.subr.bf16.mxu1 %v5458_v44  ;;  %3347 = vmatprep.subr.bf16.mxu0 %v5458_v44 }
 0x25e   : > { %3364 = vmatpush3.bf16.msra.mxu1 %v1368_v1  ;;  %3348 = vmatpush3.bf16.msra.mxu0 %v1358_v9  ;;  %v4984_v1 = vmul.f32 %v1185_v53, %v4667_v41  ;;  %v4988_v9 = vmul.f32 %v4758_v63, %v4499_v60 }
 0x25f   : > { %3365 = vmatprep.subr.bf16.mxu1 %v5458_v44  ;;  %3349 = vmatprep.subr.bf16.mxu0 %v5458_v44 }
 0x262   : > { %3366 = vmatpush3.bf16.msra.mxu1 %v1367_v21  ;;  %3350 = vmatpush3.bf16.msra.mxu0 %v1357_v30 }
 0x263   : > { %3367 = vmatprep.subr.bf16.mxu1 %v5458_v44  ;;  %3351 = vmatprep.subr.bf16.mxu0 %v5458_v44 }
 0x266   : > { %3368 = vmatpush3.bf16.msra.mxu1 %v1366_v31  ;;  %3352 = vmatpush3.bf16.msra.mxu0 %v1356_v19  ;;  %v5028_v19 = vmul.f32 %v4758_v63, %v4618_v2  ;;  %v5064_v31 = vmul.f32 %v4851_v14, %v4667_v41 }
 0x267   : > { %3369 = vmatprep.subr.bf16.mxu1 %v5458_v44  ;;  %3377 = vmatprep.subr.bf16.mxu0 %v5458_v44 }
 0x268   : > { %5511 = vst [vmem:[#allocation32_spill] sm:$0xff] %v5064_v31 }
 0x26a   : > { %3370 = vmatpush3.bf16.msra.mxu1 %v1365_v40  ;;  %v5032_v40 = vmul.f32 %v4851_v14, %v4607_v59 }
 0x26b   : > { %3371 = vmatprep.subr.bf16.mxu1 %v5458_v44 }
 0x26e   : > { %3372 = vmatpush3.bf16.msra.mxu1 %v1364_v32  ;;  %v5042_v32 = vmul.f32 %v4851_v14, %v4627_v15 }
 0x26f   : > { %3397 = vmatprep.subr.bf16.mxu1 %v5458_v44 }
 0x2c9   : > { %v1426_v11 = vpop.f32.mrf.mxu0 }
 0x2ca   : > { %1556 = vmax.xlane.f32.xlu0 %v1426_v11 }
 0x2cb   : > { %v3275_v30 = vpop.f32.mrf.mxu0 }
 0x2cd   : > { %v1429_v21 = vpop.f32.mrf.mxu0 }
 0x2ce   : > { %1558 = vmax.xlane.f32.xlu0 %v1429_v21 }
 0x2cf   : > { %v3276_v63 = vpop.f32.mrf.mxu0 }
 0x2d1   : > { %v1467_v0 = vpop.f32.mrf.mxu1 }
 0x2d2   : > { %1560 = vmax.xlane.f32.xlu0 %v1467_v0 }
 0x2d3   : > { %v3295_v35 = vpop.f32.mrf.mxu1 }
 0x2d5   : > { %v1470_v46 = vpop.f32.mrf.mxu1 }
 0x2d7   : > { %v3296_v43 = vpop.f32.mrf.mxu1 }
 0x309   : > { %v1508_v36 = vpop.f32.mrf.mxu0 }
 0x30a   : > { %1564 = vmax.xlane.f32.xlu1 %v1508_v36 }
 0x30b   : > { %v3315_v14 = vpop.f32.mrf.mxu0 }
 0x30d   : > { %v1511_v4 = vpop.f32.mrf.mxu0 }
 0x30e   : > { %1566 = vmax.xlane.f32.xlu1 %v1511_v4 }
 0x30f   : > { %v3316_v53 = vpop.f32.mrf.mxu0 }
 0x311   : > { %v5070_v44 = vpop.f32.mrf.mxu1 }
 0x312   : > { %1568 = vmax.xlane.f32.xlu0 %v5070_v44  ;;  %1562 = vmax.xlane.f32.xlu1 %v1470_v46 }
 0x313   : > { %v3335_v30 = vpop.f32.mrf.mxu1 }
 0x314   : > { %v5512_v30 = vpack.c.bf16 %v4923_v57, %v4920_v6  ;;  %v5517_v6 = vpack.c.bf16 %v4955_v27, %v4952_v13  ;;  %v5518_v57 = vpack.c.bf16 %v4966_v34, %v4963_v51 }
 0x315   : > { %v5073_v48 = vpop.f32.mrf.mxu1 }
 0x316   : > { %1570 = vmax.xlane.f32.xlu1 %v5073_v48 }
 0x317   : > { %v3336_v63 = vpop.f32.mrf.mxu1 }
 0x353   : > { %v1557_v35 = vpop.xlane.xlu0 %1556 }
 0x354   : > { %v1572_v25 = vsub.f32 %v1426_v11, %v1557_v35 }
 0x356   : > { %v1580_v43 = vmul.f32 1.442695, %v1572_v25 }
 0x357   : > { %v1559_v47 = vpop.xlane.xlu0 %1558 }
 0x358   : > { %v1573_v10 = vsub.f32 %v1429_v21, %v1559_v47  ;;  %3668 = vpow2.f32 %v1580_v43  ;;  %v5515_v47 = vpack.c.bf16 %v4937_v55, %v4934_v58 }
 0x35a   : > { %v1582_v14 = vmul.f32 1.442695, %v1573_v10  ;;  %v5514_v10 = vpack.c.bf16 %v4930_v56, %v4927_v37  ;;  %v5519_v37 = vpack.c.bf16 %v4975_v52, %v4972_v38  ;;  %v5520_v56 = vpack.c.bf16 %v4984_v1, %v4979_v3 }
 0x35c   : > { %3670 = vpow2.f32 %v1582_v14 }
 0x365   : > { %v3669_v53 = vpop.eup %3668 }
 0x369   : > { %v5076_v31 = vpop.eup %3670 }
 0x36a   : > { %v1596_v42 = vpack.c.bf16 %v5076_v31, %v3669_v53 }
 0x36c   : > { %3354 = vmatmul.mubr.bf16.vlgmr.msra.gmra.mxu0 %v1596_v42  ;;  %v5516_v42 = vpack.c.bf16 %v4944_v23, %v4941_v22  ;;  %v1561_v22 = vpop.xlane.xlu0 %1560 }
 0x36d   : > { %3378 = vmatpush3.bf16.msra.mxu0 %v5512_v30  ;;  %3393 = vmatprep.mubr.msk.bf16.mxu0 %vm4048_vm0, %v5513_v5  ;;  %v1574_v13 = vsub.f32 %v1467_v0, %v1561_v22 }
 0x36e   : > { %3379 = vmatprep.subr.bf16.mxu0 %v5513_v5 }
 0x36f   : > { %v1584_v38 = vmul.f32 1.442695, %v1574_v13 }
 0x371   : > { %3380 = vmatpush3.bf16.msra.mxu0 %v5514_v10 }
 0x372   : > { %3381 = vmatprep.subr.bf16.mxu0 %v5513_v5 }
 0x375   : > { %3382 = vmatpush3.bf16.msra.mxu0 %v5515_v47 }
 0x376   : > { %3383 = vmatprep.subr.bf16.mxu0 %v5513_v5 }
 0x379   : > { %3384 = vmatpush3.bf16.msra.mxu0 %v5516_v42 }
 0x37a   : > { %3385 = vmatprep.subr.bf16.mxu0 %v5513_v5 }
 0x37d   : > { %3386 = vmatpush3.bf16.msra.mxu0 %v5517_v6 }
 0x37e   : > { %3387 = vmatprep.subr.bf16.mxu0 %v5513_v5 }
 0x381   : > { %3388 = vmatpush3.bf16.msra.mxu0 %v5518_v57 }
 0x382   : > { %3389 = vmatprep.subr.bf16.mxu0 %v5513_v5 }
 0x385   : > { %3390 = vmatpush3.bf16.msra.mxu0 %v5519_v37 }
 0x386   : > { %3391 = vmatprep.subr.bf16.mxu0 %v5513_v5 }
 0x389   : > { %3392 = vmatpush3.bf16.msra.mxu0 %v5520_v56 }
 0x38a   : > { %3417 = vmatprep.subr.mxu0 %v4504_v61 }
 0x393   : > { %v1565_v58 = vpop.xlane.xlu1 %1564 }
 0x394   : > { %v1576_v55 = vsub.f32 %v1508_v36, %v1565_v58 }
 0x396   : > { %v1588_v23 = vmul.f32 1.442695, %v1576_v55 }
 0x397   : > { %v1567_v25 = vpop.xlane.xlu1 %1566 }
 0x398   : > { %v1577_v27 = vsub.f32 %v1511_v4, %v1567_v25  ;;  %3672 = vpow2.f32 %v1588_v23 }
 0x39a   : > { %v1590_v51 = vmul.f32 1.442695, %v1577_v27 }
 0x39b   : > { %v1563_v34 = vpop.xlane.xlu1 %1562 }
 0x39c   : > { %3674 = vpow2.f32 %v1590_v51  ;;  %v1575_v52 = vsub.f32 %v1470_v46, %v1563_v34  ;;  %v5521_v46 = vpack.c.bf16 %v4992_v54, %v4988_v9 }
 0x39d   : > { %3676 = vpow2.f32 %v1584_v38 }
 0x39e   : > { %v1586_v21 = vmul.f32 1.442695, %v1575_v52 }
 0x3a0   : > { %3678 = vpow2.f32 %v1586_v21 }
 0x3a5   : > { %v5113_v3 = vpop.eup %3672 }
 0x3a9   : > { %v5115_v1 = vpop.eup %3674 }
 0x3aa   : > { %v1598_v36 = vpack.c.bf16 %v5115_v1, %v5113_v3  ;;  %v3677_v11 = vpop.eup %3676 }
 0x3ac   : > { %3394 = vmatmul.mubr.bf16.vlgmr.msra.gmra.mxu0 %v1598_v36 }
 0x3ad   : > { %3418 = vmatpush3.msra.mxu0 %v4504_v61  ;;  %3449 = vmatprep.mubr.f32.mxu0 %v3669_v53  ;;  %v3679_v4 = vpop.eup %3678  ;;  %v1571_v61 = vpop.xlane.xlu1 %1570 }
 0x3ae   : > { %3419 = vmatprep.subr.mxu0 %v4499_v60  ;;  %v1597_v0 = vpack.c.bf16 %v3679_v4, %v3677_v11  ;;  %v1579_v9 = vsub.f32 %v5073_v48, %v1571_v61 }
 0x3af   : > { %3420 = vmatpush3.msra.mxu0 %v4499_v60  ;;  %v1569_v60 = vpop.xlane.xlu0 %1568 }
 0x3b0   : > { %3421 = vmatprep.subr.mxu0 %v4523_v8  ;;  %3374 = vmatmul.mubr.bf16.vlgmr.msra.gmra.mxu1 %v1597_v0  ;;  %v1594_v54 = vmul.f32 1.442695, %v1579_v9 }
 0x3b1   : > { %3422 = vmatpush3.msra.mxu0 %v4523_v8  ;;  %3398 = vmatpush3.bf16.msra.mxu1 %v5521_v46  ;;  %v5522_v8 = vpack.c.bf16 %v5002_v50, %v4998_v20  ;;  %v5533_v20 = vmov 0   ;;  %v3620_v50 = vld [vmem:[%s4350_s22 + $0x38] sm:$0xff]  }
 0x3b2   : > { %3423 = vmatprep.subr.mxu0 %v4531_v12  ;;  %3399 = vmatprep.subr.bf16.mxu1 %v5513_v5  ;;  %3680 = vpow2.f32 %v1594_v54 }
 0x3b3   : > { %3424 = vmatpush3.msra.mxu0 %v4531_v12  ;;  %3413 = vmatprep.mubr.msk.bf16.mxu1 %vm4048_vm0, %v5513_v5  ;;  %v1578_v12 = vsub.f32 %v5070_v44, %v1569_v60  ;;  %v5524_v44 = vpack.c.bf16 %v5024_v17, %v5018_v62  ;;  %v3623_v62 = vld [vmem:[%s4350_s22 + $0x20] sm:$0xff]   ;;  %v3625_v17 = vld [vmem:[%s4350_s22 + $0x10] sm:$0xff]  }
 0x3b4   : > { %3425 = vmatprep.subr.mxu0 %v4553_v24 }
 0x3b5   : > { %3426 = vmatpush3.msra.mxu0 %v4553_v24  ;;  %3400 = vmatpush3.bf16.msra.mxu1 %v5522_v8  ;;  %v5523_v24 = vpack.c.bf16 %v5014_v16, %v5006_v7  ;;  %v1592_v48 = vmul.f32 1.442695, %v1578_v12  ;;  %v3621_v7 = vld [vmem:[%s4350_s22 + $0x30] sm:$0xff]   ;;  %v3622_v16 = vld [vmem:[%s4350_s22 + $0x28] sm:$0xff]  }
 0x3b6   : > { %3427 = vmatprep.subr.mxu0 %v4566_v29  ;;  %3401 = vmatprep.subr.bf16.mxu1 %v5513_v5 }
 0x3b7   : > { %3428 = vmatpush3.msra.mxu0 %v4566_v29  ;;  %3682 = vpow2.f32 %v1592_v48  ;;  %v5525_v29 = vpack.c.bf16 %v5032_v40, %v5028_v19  ;;  %v3626_v19 = vld [vmem:[%s4350_s22 + $0x8] sm:$0xff]   ;;  %v3627_v40 = vld [vmem:[%s4350_s22] sm:$0xff]  }
 0x3b8   : > { %3429 = vmatprep.subr.mxu0 %v4583_v39 }
 0x3b9   : > { %3430 = vmatpush3.msra.mxu0 %v4583_v39  ;;  %3402 = vmatpush3.bf16.msra.mxu1 %v5523_v24  ;;  %v5526_v39 = vpack.c.bf16 %v5042_v32, %v5038_v28 }
 0x3ba   : > { %3431 = vmatprep.subr.mxu0 %v4596_v45  ;;  %3403 = vmatprep.subr.bf16.mxu1 %v5513_v5 }
 0x3bb   : > { %3432 = vmatpush3.msra.mxu0 %v4596_v45  ;;  %v5527_v45 = vld [vmem:[#allocation30_spill] sm:$0xff] }
 0x3bc   : > { %3433 = vmatprep.subr.mxu0 %v4607_v59 }
 0x3bd   : > { %3434 = vmatpush3.msra.mxu0 %v4607_v59  ;;  %3404 = vmatpush3.bf16.msra.mxu1 %v5524_v44  ;;  %v5528_v59 = vpack.c.bf16 %v5054_v49, %v5527_v45 }
 0x3be   : > { %3435 = vmatprep.subr.mxu0 %v4618_v2  ;;  %3405 = vmatprep.subr.bf16.mxu1 %v5513_v5 }
 0x3bf   : > { %3436 = vmatpush3.msra.mxu0 %v4618_v2  ;;  %v5529_v2 = vld [vmem:[#allocation29_spill] sm:$0xff] }
 0x3c0   : > { %3437 = vmatprep.subr.mxu0 %v4627_v15 }
 0x3c1   : > { %3438 = vmatpush3.msra.mxu0 %v4627_v15  ;;  %3406 = vmatpush3.bf16.msra.mxu1 %v5525_v29  ;;  %v3681_v15 = vpop.eup %3680 }
 0x3c2   : > { %3439 = vmatprep.subr.mxu0 %v4638_v18  ;;  %3407 = vmatprep.subr.bf16.mxu1 %v5513_v5 }
 0x3c3   : > { %3440 = vmatpush3.msra.mxu0 %v4638_v18 }
 0x3c4   : > { %3441 = vmatprep.subr.mxu0 %v4647_v26  ;;  %v3683_v18 = vpop.eup %3682 }
 0x3c5   : > { %3442 = vmatpush3.msra.mxu0 %v4647_v26  ;;  %3408 = vmatpush3.bf16.msra.mxu1 %v5526_v39  ;;  %v5530_v26 = vld [vmem:[#allocation32_spill] sm:$0xff]  ;;  %v1599_v49 = vpack.c.bf16 %v3681_v15, %v3683_v18 }
 0x3c6   : > { %3443 = vmatprep.subr.mxu0 %v4658_v33  ;;  %3409 = vmatprep.subr.bf16.mxu1 %v5513_v5 }
 0x3c7   : > { %3444 = vmatpush3.msra.mxu0 %v4658_v33  ;;  %v5531_v33 = vld [vmem:[#allocation31_spill] sm:$0xff] }
 0x3c8   : > { %3445 = vmatprep.subr.mxu0 %v4667_v41 }
 0x3c9   : > { %3446 = vmatpush3.msra.mxu0 %v4667_v41  ;;  %3410 = vmatpush3.bf16.msra.mxu1 %v5528_v59  ;;  %v5532_v41 = vpack.c.bf16 %v5530_v26, %v5531_v33 }
 0x3ca   : > { %3447 = vmatprep.subr.mxu0 %v5529_v2  ;;  %3411 = vmatprep.subr.bf16.mxu1 %v5513_v5 }
 0x3cb   : > { %3448 = vmatpush3.msra.mxu0 %v5529_v2 }
 0x3cc   : > { %3450 = vmatmul.mubr.f32.vlgmr.msra.gmra.mxu0 %v5076_v31  ;;  %v3624_v31 = vld [vmem:[%s4350_s22 + $0x18] sm:$0xff]  }
 0x3cd   : > { %3452 = vmatprep.mubr.f32.mxu0 %v3677_v11  ;;  %3412 = vmatpush3.bf16.msra.mxu1 %v5532_v41  ;;  %v3020_v41 = vld [vmem:[%s821_s20] ss:$0 sm:$0xff] }
 0x3ce   : > { %3461 = vmatprep.subr.bf16.mxu1 %v3620_v50 }
 0x3d0   : > { %3453 = vmatmul.mubr.f32.gmra.mxu0 %v3679_v4  ;;  %3414 = vmatmul.mubr.bf16.vlgmr.msra.gmra.mxu1 %v1599_v49 }
 0x3d1   : > { %3455 = vmatprep.mubr.f32.mxu0 %v5113_v3  ;;  %3462 = vmatpush3.bf16.msra.mxu1 %v3620_v50 }
 0x3d2   : > { %3463 = vmatprep.subr.bf16.mxu1 %v3621_v7 }
 0x3d4   : > { %3456 = vmatmul.mubr.f32.gmra.mxu0 %v5115_v1 }
 0x3d5   : > { %3458 = vmatprep.mubr.f32.mxu0 %v3683_v18  ;;  %3464 = vmatpush3.bf16.msra.mxu1 %v3621_v7 }
 0x3d6   : > { %3465 = vmatprep.subr.bf16.mxu1 %v3622_v16 }
 0x3d8   : > { %3459 = vmatmul.mubr.f32.gmra.mxu0 %v3681_v15 }
 0x3d9   : > { %2304 = vmatprep.mubr.bf16.mxu0 %v5533_v20  ;;  %3466 = vmatpush3.bf16.msra.mxu1 %v3622_v16 }
 0x3da   : > { %3467 = vmatprep.subr.bf16.mxu1 %v3623_v62 }
 0x3dd   : > { %3468 = vmatpush3.bf16.msra.mxu1 %v3623_v62  ;;  %v3732_v62 = vld [vmem:[%s5505_s30] sm:$0xff] }
 0x3de   : > { %3469 = vmatprep.subr.bf16.mxu1 %v3624_v31 }
 0x3e1   : > { %3470 = vmatpush3.bf16.msra.mxu1 %v3624_v31 }
 0x3e2   : > { %3471 = vmatprep.subr.bf16.mxu1 %v3625_v17 }
 0x3e5   : > { %3472 = vmatpush3.bf16.msra.mxu1 %v3625_v17 }
 0x3e6   : > { %3473 = vmatprep.subr.bf16.mxu1 %v3626_v19 }
 0x3e9   : > { %3474 = vmatpush3.bf16.msra.mxu1 %v3626_v19 }
 0x3ea   : > { %3475 = vmatprep.subr.bf16.mxu1 %v3627_v40 }
 0x3ed   : > { %3476 = vmatpush3.bf16.msra.mxu1 %v3627_v40 }
 0x42c   : > { %v1634_v28 = vpop.f32.mrf.mxu0 }
 0x42e   : > { %v3355_v32 = vpop.f32.mrf.mxu0 }
 0x42f   : > { %v3733_v32 = vld [vmem:[%s5505_s30 + $0x8] sm:$0xff] }
 0x430   : > { %v1637_v5 = vpop.f32.mrf.mxu0 }
 0x432   : > { %v3356_v63 = vpop.f32.mrf.mxu0 }
 0x433   : > { %v3734_v63 = vld [vmem:[%s5505_s30 + $0x10] sm:$0xff] }
 0x46c   : > { %v1716_v35 = vpop.f32.mrf.mxu0 }
 0x46e   : > { %v3395_v43 = vpop.f32.mrf.mxu0 }
 0x470   : > { %v1719_v14 = vpop.f32.mrf.mxu0  ;;  %v1675_v53 = vpop.f32.mrf.mxu1 }
 0x472   : > { %v3396_v30 = vpop.f32.mrf.mxu0  ;;  %v3375_v10 = vpop.f32.mrf.mxu1 }
 0x473   : > { %v3735_v10 = vld [vmem:[%s5505_s30 + $0x18] sm:$0xff] }
 0x474   : > { %v1678_v47 = vpop.f32.mrf.mxu1 }
 0x476   : > { %v3376_v42 = vpop.f32.mrf.mxu1 }
 0x477   : > { %v3736_v42 = vld [vmem:[%s5505_s30 + $0x20] sm:$0xff] }
 0x48c   : > { %v3451_v6 = vpop.f32.mrf.mxu0 }
 0x48d   : > { %v1870_v57 = vmax.f32 %v3451_v6, 1e-30 }
 0x48e   : > { %v1830_v37 = vpop.f32.mrf.mxu0 }
 0x48f   : > { %3684 = vrcp.f32 %v1870_v57  ;;  %v1869_v56 = vmax.f32 %v1830_v37, 1e-30 }
 0x490   : > { %v3454_v58 = vpop.f32.mrf.mxu0  ;;  %v1757_v55 = vpop.f32.mrf.mxu1 }
 0x491   : > { %3686 = vrcp.f32 %v1869_v56  ;;  %v1872_v22 = vmax.f32 %v3454_v58, 1e-30  ;;  %v3737_v58 = vld [vmem:[%s5505_s30 + $0x28] sm:$0xff] }
 0x492   : > { %v1840_v23 = vpop.f32.mrf.mxu0  ;;  %v3415_v25 = vpop.f32.mrf.mxu1 }
 0x493   : > { %3688 = vrcp.f32 %v1872_v22  ;;  %v1871_v13 = vmax.f32 %v1840_v23, 1e-30  ;;  %v3738_v22 = vld [vmem:[%s5505_s30 + $0x30] sm:$0xff]  ;;  %v3739_v25 = vld [vmem:[%s5505_s30 + $0x38] sm:$0xff] }
 0x494   : > { %v3457_v27 = vpop.f32.mrf.mxu0  ;;  %v1760_v51 = vpop.f32.mrf.mxu1 }
 0x495   : > { %3690 = vrcp.f32 %v1871_v13  ;;  %v1874_v34 = vmax.f32 %v3457_v27, 1e-30  ;;  %v3628_v27 = vld [vmem:[%s4321_s8 + $0x70] ss:$8 sps:$4 sm:$0xff]  }
 0x496   : > { %v1850_v38 = vpop.f32.mrf.mxu0  ;;  %v3416_v52 = vpop.f32.mrf.mxu1 }
 0x497   : > { %3692 = vrcp.f32 %v1874_v34  ;;  %v1873_v21 = vmax.f32 %v1850_v38, 1e-30 }
 0x498   : > { %v3460_v3 = vpop.f32.mrf.mxu0 }
 0x499   : > { %3694 = vrcp.f32 %v1873_v21  ;;  %v1876_v1 = vmax.f32 %v3460_v3, 1e-30 }
 0x49a   : > { %v1860_v36 = vpop.f32.mrf.mxu0 }
 0x49b   : > { %3696 = vrcp.f32 %v1876_v1  ;;  %v1875_v11 = vmax.f32 %v1860_v36, 1e-30 }
 0x49c   : > { %v3685_v4 = vpop.eup %3684 }
 0x49d   : > { %3698 = vrcp.f32 %v1875_v11  ;;  %v1886_v61 = vmul.f32 %v3685_v4, %v1637_v5 }
 0x49e   : > { %v3687_v0 = vpop.eup %3686 }
 0x49f   : > { %v1885_v46 = vmul.f32 %v3687_v0, %v1634_v28 }
 0x4a0   : > { %v3689_v60 = vpop.eup %3688 }
 0x4a1   : > { %v1893_v8 = vpack.c.bf16 %v1886_v61, %v1885_v46  ;;  %v1888_v24 = vmul.f32 %v3689_v60, %v1678_v47 }
 0x4a2   : > { %v3691_v9 = vpop.eup %3690 }
 0x4a3   : > { %3477 = vmatprep.mubr.bf16.mxu1 %v1893_v8  ;;  %v1887_v12 = vmul.f32 %v3691_v9, %v1675_v53 }
 0x4a4   : > { %v3693_v54 = vpop.eup %3692 }
 0x4a5   : > { %v1894_v48 = vpack.c.bf16 %v1888_v24, %v1887_v12  ;;  %v1890_v39 = vmul.f32 %v3693_v54, %v1719_v14 }
 0x4a6   : > { %v3695_v44 = vpop.eup %3694 }
 0x4a7   : > { %3478 = vmatmul.mubr.bf16.vlgmr.msra.gmra.mxu1 %v1894_v48  ;;  %v1889_v29 = vmul.f32 %v3695_v44, %v1716_v35 }
 0x4a8   : > { %v3697_v45 = vpop.eup %3696 }
 0x4a9   : > { %v1895_v59 = vpack.c.bf16 %v1890_v39, %v1889_v29  ;;  %v1892_v18 = vmul.f32 %v3697_v45, %v1760_v51  ;;  %v3630_v51 = vld [vmem:[%s4321_s8 + $0x74] ss:$8 sps:$4 sm:$0xff]  }
 0x4aa   : > { %v3699_v2 = vpop.eup %3698  ;;  %2272 = vmatprep.subr.bf16.mxu0 %v3630_v51 }
 0x4ab   : > { %3481 = vmatprep.mubr.bf16.mxu1 %v1895_v59  ;;  %v1891_v15 = vmul.f32 %v3699_v2, %v1757_v55  ;;  %2273 = vmatpush1.bf16.msra.mxu0 %v3628_v27 }
 0x4ad   : > { %v1896_v26 = vpack.c.bf16 %v1892_v18, %v1891_v15 }
 0x4af   : > { %3482 = vmatmul.mubr.bf16.gmra.mxu1 %v1896_v26 }
 0x567   : > { %v3479_v33 = vpop.f32.mrf.mxu1 }
 0x568   : > { %v2011_v16 = vadd.f32 %v3479_v33, %v3020_v41 }
 0x569   : > { %v2002_v49 = vpop.f32.mrf.mxu1 }
 0x56a   : > { %v2003_v50 = vadd.f32 %v3020_v41, %v2002_v49  ;;  %v2035_v35 = vadd.f32 %v3734_v63, %v2011_v16  ;;  %v3631_v16 = vld [vmem:[%s4321_s8 + $0x60] ss:$8 sps:$4 sm:$0xff]   ;;  %v3648_v63 = vld [vmem:[%s4321_s8 + $0x14] ss:$8 sps:$4 sm:$0xff]  }
 0x56b   : > { %v3480_v7 = vpop.f32.mrf.mxu1 }
 0x56c   : > { %v2033_v31 = vadd.f32 %v3732_v62, %v2003_v50  ;;  %v2014_v28 = vadd.f32 %v3480_v7, %v3020_v41  ;;  %v3633_v7 = vld [vmem:[%s4321_s8 + $0x64] ss:$8 sps:$4 sm:$0xff]   ;;  %v3636_v62 = vld [vmem:[%s4321_s8 + $0x54] ss:$8 sps:$4 sm:$0xff]  }
 0x56d   : > { %v2005_v17 = vpop.f32.mrf.mxu1  ;;  %2274 = vmatprep.subr.bf16.mxu0 %v3633_v7  ;;  %v3030_v7 = vld [vmem:[%s5536_s3] ss:$0 sm:$0xff] }
 0x56e   : > { %v2006_v19 = vadd.f32 %v3020_v41, %v2005_v17  ;;  %2043 = vadd.xlane.f32.xlu0 %v2033_v31  ;;  %v2036_v47 = vadd.f32 %v3735_v10, %v2014_v28  ;;  %2275 = vmatpush1.bf16.msra.mxu0 %v3631_v16  ;;  %v3639_v17 = vld [vmem:[%s4321_s8 + $0x44] ss:$8 sps:$4 sm:$0xff]   ;;  %v3640_v28 = vld [vmem:[%s4321_s8 + $0x30] ss:$8 sps:$4 sm:$0xff]  }
 0x56f   : > { %v3483_v40 = vpop.f32.mrf.mxu1  ;;  %2276 = vmatprep.subr.bf16.mxu0 %v3636_v62  ;;  %v3654_v10 = vld [vmem:[%s4327_s24 + $0x70] sm:$0xff]  }
 0x570   : > { %v2034_v5 = vadd.f32 %v3733_v32, %v2006_v19  ;;  %v2027_v30 = vadd.f32 %v3483_v40, %v3020_v41  ;;  %v3637_v19 = vld [vmem:[%s4321_s8 + $0x40] ss:$8 sps:$4 sm:$0xff]   ;;  %v3642_v40 = vld [vmem:[%s4321_s8 + $0x34] ss:$8 sps:$4 sm:$0xff]   ;;  %v3645_v32 = vld [vmem:[%s4321_s8 + $0x24] ss:$8 sps:$4 sm:$0xff]  }
 0x571   : > { %v2018_v43 = vpop.f32.mrf.mxu1 }
 0x572   : > { %v2019_v14 = vadd.f32 %v3020_v41, %v2018_v43  ;;  %2045 = vadd.xlane.f32.xlu1 %v2034_v5  ;;  %2047 = vadd.xlane.f32.xlu0 %v2035_v35  ;;  %v2039_v23 = vadd.f32 %v3738_v22, %v2027_v30  ;;  %v3651_v43 = vld [vmem:[%s4321_s8 + $0x4] ss:$8 sps:$4 sm:$0xff]   ;;  %v3653_v30 = vld [vmem:[%s4327_s24 + $0x38] sm:$0xff]  }
 0x573   : > { %v3484_v53 = vpop.f32.mrf.mxu1 }
 0x574   : > { %v2037_v6 = vadd.f32 %v3736_v42, %v2019_v14  ;;  %v2030_v56 = vadd.f32 %v3484_v53, %v3020_v41  ;;  %v3649_v14 = vld [vmem:[%s4321_s8] ss:$8 sps:$4 sm:$0xff]   ;;  %v3652_v53 = vld [vmem:[%s4327_s24 + $0x78] sm:$0xff]  }
 0x575   : > { %v2021_v57 = vpop.f32.mrf.mxu1  ;;  %3193 = vmatprep.subr.bf16.mxu1 %v3652_v53  ;;  %v3656_v42 = vld [vmem:[%s4327_s24 + $0x68] sm:$0xff]  }
 0x576   : > { %v2022_v37 = vadd.f32 %v3020_v41, %v2021_v57  ;;  %2049 = vadd.xlane.f32.xlu1 %v2036_v47  ;;  %2051 = vadd.xlane.f32.xlu0 %v2037_v6  ;;  %v2040_v13 = vadd.f32 %v3739_v25, %v2030_v56  ;;  %v3658_v57 = vld [vmem:[%s4327_s24 + $0x60] sm:$0xff]   ;;  %v3660_v56 = vld [vmem:[%s4327_s24 + $0x58] sm:$0xff]  }
 0x577   : > { %3194 = vmatpush3.bf16.msra.mxu1 %v3653_v30 }
 0x578   : > { %v2038_v55 = vadd.f32 %v3737_v58, %v2022_v37  ;;  %3195 = vmatprep.subr.bf16.mxu1 %v3654_v10  ;;  %v3659_v37 = vld [vmem:[%s4327_s24 + $0x20] sm:$0xff]   ;;  %v3661_v58 = vld [vmem:[%s4327_s24 + $0x18] sm:$0xff]  }
 0x57a   : > { %2053 = vadd.xlane.f32.xlu1 %v2038_v55  ;;  %2055 = vadd.xlane.f32.xlu0 %v2039_v23 }
 0x57e   : > { %2057 = vadd.xlane.f32.xlu1 %v2040_v13 }
 0x5f7   : > { %v2044_v34 = vpop.xlane.xlu0 %2043 }
 0x5f8   : > { %v2060_v38 = vmul.f32 0.0078125, %v2044_v34 }
 0x5fa   : > { %v5228_v52 = vsub.f32 %v2033_v31, %v2060_v38  ;;  %v3634_v31 = vld [vmem:[%s4321_s8 + $0x50] ss:$8 sps:$4 sm:$0xff]  }
 0x5fb   : > { %v2046_v21 = vpop.xlane.xlu1 %2045  ;;  %v2048_v3 = vpop.xlane.xlu0 %2047  ;;  %2277 = vmatpush1.bf16.msra.mxu0 %v3634_v31 }
 0x5fc   : > { %v2061_v1 = vmul.f32 0.0078125, %v2046_v21  ;;  %v2062_v36 = vmul.f32 0.0078125, %v2048_v3  ;;  %v2076_v11 = vmul.f32 %v5228_v52, %v5228_v52  ;;  %2278 = vmatprep.subr.bf16.mxu0 %v3639_v17 }
 0x5fe   : > { %v5232_v4 = vsub.f32 %v2034_v5, %v2061_v1  ;;  %v5234_v0 = vsub.f32 %v2035_v35, %v2062_v36  ;;  %2084 = vadd.xlane.f32.xlu0 %v2076_v11  ;;  %v3643_v5 = vld [vmem:[%s4321_s8 + $0x20] ss:$8 sps:$4 sm:$0xff]   ;;  %v3646_v35 = vld [vmem:[%s4321_s8 + $0x10] ss:$8 sps:$4 sm:$0xff]   ;;  %s5535_s8 = scalar_lea.vmem [#allocation4], %s4302_s15 }
 0x5ff   : > { %v2050_v46 = vpop.xlane.xlu1 %2049  ;;  %v2052_v61 = vpop.xlane.xlu0 %2051  ;;  %2279 = vmatpush1.bf16.msra.mxu0 %v3637_v19 }
 0x600   : > { %v2063_v60 = vmul.f32 0.0078125, %v2050_v46  ;;  %v2064_v8 = vmul.f32 0.0078125, %v2052_v61  ;;  %v2077_v9 = vmul.f32 %v5232_v4, %v5232_v4  ;;  %v2078_v12 = vmul.f32 %v5234_v0, %v5234_v0  ;;  %2280 = vmatprep.subr.bf16.mxu0 %v3642_v40 }
 0x602   : > { %v5240_v24 = vsub.f32 %v2036_v47, %v2063_v60  ;;  %v5242_v54 = vsub.f32 %v2037_v6, %v2064_v8  ;;  %2086 = vadd.xlane.f32.xlu1 %v2077_v9  ;;  %2088 = vadd.xlane.f32.xlu0 %v2078_v12  ;;  %v3655_v47 = vld [vmem:[%s4327_s24 + $0x30] sm:$0xff]   ;;  %v3657_v6 = vld [vmem:[%s4327_s24 + $0x28] sm:$0xff]  }
 0x603   : > { %v2054_v48 = vpop.xlane.xlu1 %2053  ;;  %v2056_v44 = vpop.xlane.xlu0 %2055  ;;  %2281 = vmatpush1.bf16.msra.mxu0 %v3640_v28  ;;  %3196 = vmatpush3.bf16.msra.mxu1 %v3655_v47 }
 0x604   : > { %v2065_v29 = vmul.f32 0.0078125, %v2054_v48  ;;  %v2066_v39 = vmul.f32 0.0078125, %v2056_v44  ;;  %v2079_v45 = vmul.f32 %v5240_v24, %v5240_v24  ;;  %v2080_v59 = vmul.f32 %v5242_v54, %v5242_v54  ;;  %2282 = vmatprep.subr.bf16.mxu0 %v3645_v32  ;;  %3197 = vmatprep.subr.bf16.mxu1 %v3656_v42 }
 0x606   : > { %v5248_v2 = vsub.f32 %v2038_v55, %v2065_v29  ;;  %v5250_v15 = vsub.f32 %v2039_v23, %v2066_v39  ;;  %2090 = vadd.xlane.f32.xlu1 %v2079_v45  ;;  %2092 = vadd.xlane.f32.xlu0 %v2080_v59  ;;  %v3029_v45 = vld [vmem:[%s5535_s8] ss:$0 sm:$0xff] }
 0x607   : > { %v2058_v18 = vpop.xlane.xlu1 %2057  ;;  %2283 = vmatpush1.bf16.msra.mxu0 %v3643_v5  ;;  %3198 = vmatpush3.bf16.msra.mxu1 %v3657_v6 }
 0x608   : > { %v2067_v26 = vmul.f32 0.0078125, %v2058_v18  ;;  %v2081_v33 = vmul.f32 %v5248_v2, %v5248_v2  ;;  %v2082_v41 = vmul.f32 %v5250_v15, %v5250_v15  ;;  %2284 = vmatprep.subr.bf16.mxu0 %v3648_v63  ;;  %3199 = vmatprep.subr.bf16.mxu1 %v3658_v57 }
 0x60a   : > { %v5256_v49 = vsub.f32 %v2040_v13, %v2067_v26  ;;  %2094 = vadd.xlane.f32.xlu1 %v2081_v33  ;;  %2096 = vadd.xlane.f32.xlu0 %v2082_v41 }
 0x60b   : > { %2285 = vmatpush1.bf16.msra.mxu0 %v3646_v35  ;;  %3200 = vmatpush3.bf16.msra.mxu1 %v3659_v37 }
 0x60c   : > { %v2083_v50 = vmul.f32 %v5256_v49, %v5256_v49  ;;  %2286 = vmatprep.subr.bf16.mxu0 %v3651_v43  ;;  %3201 = vmatprep.subr.bf16.mxu1 %v3660_v56 }
 0x60e   : > { %2098 = vadd.xlane.f32.xlu1 %v2083_v50 }
 0x60f   : > { %2287 = vmatpush1.bf16.msra.mxu0 %v3649_v14  ;;  %3202 = vmatpush3.bf16.msra.mxu1 %v3661_v58 }
 0x687   : > { %v2085_v55 = vpop.xlane.xlu0 %2084 }
 0x688   : > { %v2100_v22 = vmul.f32 0.0078125, %v2085_v55  ;;  %v3663_v55 = vld [vmem:[%s4327_s24 + $0x10] sm:$0xff]  }
 0x68a   : > { %v2108_v23 = vadd.f32 1e-05, %v2100_v22  ;;  %v3664_v22 = vld [vmem:[%s4327_s24 + $0x48] sm:$0xff]  }
 0x68b   : > { %v2087_v25 = vpop.xlane.xlu1 %2086  ;;  %v2089_v13 = vpop.xlane.xlu0 %2088 }
 0x68c   : > { %3700 = vrsqrt.f32 %v2108_v23  ;;  %v2101_v27 = vmul.f32 0.0078125, %v2087_v25  ;;  %v2102_v51 = vmul.f32 0.0078125, %v2089_v13  ;;  %v3665_v23 = vld [vmem:[%s4327_s24 + $0x8] sm:$0xff]   ;;  %v3666_v25 = vld [vmem:[%s4327_s24 + $0x40] sm:$0xff]  }
 0x68d   : > { %v3667_v13 = vld [vmem:[%s4327_s24] sm:$0xff]  }
 0x68e   : > { %v2109_v34 = vadd.f32 1e-05, %v2101_v27  ;;  %v2110_v38 = vadd.f32 1e-05, %v2102_v51  ;;  %v5537_v51 = vld [vmem:[#allocation28_spill] sm:$0xff] }
 0x68f   : > { %v2091_v21 = vpop.xlane.xlu1 %2090  ;;  %v2093_v3 = vpop.xlane.xlu0 %2092 }
 0x690   : > { %3702 = vrsqrt.f32 %v2109_v34  ;;  %v2103_v1 = vmul.f32 0.0078125, %v2091_v21  ;;  %v2104_v11 = vmul.f32 0.0078125, %v2093_v3  ;;  %v5538_v34 = vsub.s32 1, %v5537_v51 }
 0x691   : > { %3704 = vrsqrt.f32 %v2110_v38  ;;  %v5539_v21 = vsub.s32 0, %v5537_v51 }
 0x692   : > { %v2111_v36 = vadd.f32 1e-05, %v2103_v1  ;;  %v2112_v60 = vadd.f32 1e-05, %v2104_v11 }
 0x693   : > { %v2095_v46 = vpop.xlane.xlu1 %2094  ;;  %v2097_v9 = vpop.xlane.xlu0 %2096 }
 0x694   : > { %3706 = vrsqrt.f32 %v2111_v36  ;;  %v2105_v61 = vmul.f32 0.0078125, %v2095_v46  ;;  %v2106_v29 = vmul.f32 0.0078125, %v2097_v9 }
 0x696   : > { %v2113_v8 = vadd.f32 1e-05, %v2105_v61  ;;  %v2114_v26 = vadd.f32 1e-05, %v2106_v29 }
 0x697   : > { %v2099_v12 = vpop.xlane.xlu1 %2098 }
 0x698   : > { %3708 = vrsqrt.f32 %v2113_v8  ;;  %v2107_v48 = vmul.f32 0.0078125, %v2099_v12 }
 0x699   : > { %v3701_v44 = vpop.eup %3700  ;;  %3710 = vrsqrt.f32 %v2112_v60 }
 0x69a   : > { %v2124_v39 = vmul.f32 %v3701_v44, %v5228_v52  ;;  %v2115_v59 = vadd.f32 1e-05, %v2107_v48 }
 0x69c   : > { %v2138_v41 = vmul.f32 %v3029_v45, %v2124_v39  ;;  %3712 = vrsqrt.f32 %v2115_v59 }
 0x69d   : > { %v3703_v18 = vpop.eup %3702  ;;  %3714 = vrsqrt.f32 %v2114_v26 }
 0x69e   : > { %v2125_v33 = vmul.f32 %v3703_v18, %v5232_v4  ;;  %v3705_v50 = vpop.eup %3704  ;;  %v5290_v31 = vadd.f32 %v3030_v7, %v2138_v41 }
 0x69f   : > { %v2126_v52 = vmul.f32 %v3705_v50, %v5234_v0 }
 0x6a0   : > { %v2139_v16 = vmul.f32 %v3029_v45, %v2125_v33 }
 0x6a1   : > { %v3707_v62 = vpop.eup %3706  ;;  %v2140_v32 = vmul.f32 %v3029_v45, %v2126_v52 }
 0x6a2   : > { %v5292_v17 = vadd.f32 %v3030_v7, %v2139_v16  ;;  %v2127_v19 = vmul.f32 %v3707_v62, %v5240_v24 }
 0x6a3   : > { %v5302_v43 = vadd.f32 %v3030_v7, %v2140_v32 }
 0x6a4   : > { %v2160_v40 = vpack.c.bf16 %v5292_v17, %v5290_v31  ;;  %v2141_v4 = vmul.f32 %v3029_v45, %v2127_v19 }
 0x6a5   : > { %v3709_v28 = vpop.eup %3708 }
 0x6a6   : > { %2305 = vmatmul.mubr.bf16.vlgmr.msra.gmra.mxu0 %v2160_v40  ;;  %v3711_v5 = vpop.eup %3710  ;;  %v5299_v63 = vadd.f32 %v3030_v7, %v2141_v4  ;;  %v2129_v35 = vmul.f32 %v3709_v28, %v5248_v2 }
 0x6a7   : > { %2314 = vmatprep.mubr.bf16.mxu0 %v5533_v20  ;;  %v2128_v0 = vmul.f32 %v3711_v5, %v5242_v54 }
 0x6a8   : > { %v2161_v24 = vpack.c.bf16 %v5299_v63, %v5302_v43  ;;  %v2143_v14 = vmul.f32 %v3029_v45, %v2129_v35 }
 0x6a9   : > { %v3713_v53 = vpop.eup %3712  ;;  %v2142_v10 = vmul.f32 %v3029_v45, %v2128_v0 }
 0x6aa   : > { %v3715_v30 = vpop.eup %3714  ;;  %v5308_v47 = vadd.f32 %v3030_v7, %v2143_v14  ;;  %v2131_v2 = vmul.f32 %v3713_v53, %v5256_v49 }
 0x6ab   : > { %v5311_v42 = vadd.f32 %v3030_v7, %v2142_v10  ;;  %v2130_v54 = vmul.f32 %v3715_v30, %v5250_v15  ;;  %v3662_v15 = vld [vmem:[%s4327_s24 + $0x50] sm:$0xff]   ;;  %s5541_s24 = scalar_lea.vmem [#allocation12], %s4302_s15 }
 0x6ac   : > { %v2145_v57 = vmul.f32 %v3029_v45, %v2131_v2  ;;  %3203 = vmatprep.subr.bf16.mxu1 %v3662_v15 }
 0x6ad   : > { %v2162_v6 = vpack.c.bf16 %v5308_v47, %v5311_v42  ;;  %v2144_v37 = vmul.f32 %v3029_v45, %v2130_v54  ;;  %3204 = vmatpush3.bf16.msra.mxu1 %v3663_v55 }
 0x6ae   : > { %2315 = vmatmul.mubr.bf16.gmra.mxu0 %v2161_v24  ;;  %v5317_v56 = vadd.f32 %v3030_v7, %v2145_v57  ;;  %3205 = vmatprep.subr.bf16.mxu1 %v3664_v22 }
 0x6af   : > { %2324 = vmatprep.mubr.bf16.mxu0 %v5533_v20  ;;  %v5319_v49 = vadd.f32 %v3030_v7, %v2144_v37 }
 0x6b1   : > { %v2163_v58 = vpack.c.bf16 %v5317_v56, %v5319_v49  ;;  %3206 = vmatpush3.bf16.msra.mxu1 %v3665_v23 }
 0x6b2   : > { %3207 = vmatprep.subr.bf16.mxu1 %v3666_v25 }
 0x6b5   : > { %3208 = vmatpush3.bf16.msra.mxu1 %v3667_v13 }
 0x6b6   : > { %2325 = vmatmul.mubr.bf16.gmra.mxu0 %v2162_v6 }
 0x6b7   : > { %2334 = vmatprep.mubr.bf16.mxu0 %v5533_v20  ;;  %v2180_v20 = vld [vmem:[%s4365_s2] sm:$0x3]  ;;  %s5540_s2 = scalar_lea.vmem [#allocation10], %s4302_s15 }
 0x6b8   : > { %v2189_v38 = vrot.slane %v2180_v20, %v5538_v34  ;;  %v2185_v3 = vrot.slane %v2180_v20, %v5539_v21 }
 0x6be   : > { %2335 = vmatmul.mubr.bf16.gmra.mxu0 %v2163_v58 }
 0x766   : > { %v2306_v27 = vpop.f32.mrf.mxu0 }
 0x767   : > { %v2307_v61 = vadd.f32 %v2306_v27, %v2185_v3 }
 0x768   : > { %v2308_v1 = vpop.f32.mrf.mxu0 }
 0x769   : > { %v2309_v11 = vadd.f32 %v2308_v1, %v2189_v38  ;;  %v2345_v29 = vmax.f32 %v2307_v61, 0.0 }
 0x76a   : > { %v2310_v36 = vpop.f32.mrf.mxu0 }
 0x76b   : > { %v2311_v46 = vadd.f32 %v2310_v36, %v2185_v3  ;;  %v2346_v48 = vmax.f32 %v2309_v11, 0.0  ;;  %v3047_v11 = vld [vmem:[%s5540_s2] ss:$0 sm:$0xff] }
 0x76c   : > { %v2312_v60 = vpop.f32.mrf.mxu0 }
 0x76d   : > { %v2313_v8 = vadd.f32 %v2312_v60, %v2189_v38  ;;  %v2347_v9 = vmax.f32 %v2311_v46, 0.0 }
 0x76e   : > { %v2316_v12 = vpop.f32.mrf.mxu0 }
 0x76f   : > { %v2348_v44 = vmax.f32 %v2313_v8, 0.0  ;;  %v2361_v59 = vpack.c.bf16 %v2347_v9, %v2345_v29  ;;  %v2317_v41 = vadd.f32 %v2316_v12, %v2185_v3 }
 0x770   : > { %v2318_v39 = vpop.f32.mrf.mxu0 }
 0x771   : > { %v2362_v45 = vpack.c.bf16 %v2348_v44, %v2346_v48  ;;  %v2319_v26 = vadd.f32 %v2318_v39, %v2189_v38  ;;  %v2349_v40 = vmax.f32 %v2317_v41, 0.0 }
 0x772   : > { %v2320_v18 = vpop.f32.mrf.mxu0 }
 0x773   : > { %v2321_v33 = vadd.f32 %v2320_v18, %v2185_v3  ;;  %2536 = vmatprep.mubr.bf16.mxu1 %v2362_v45  ;;  %v2350_v52 = vmax.f32 %v2319_v26, 0.0 }
 0x774   : > { %v2322_v50 = vpop.f32.mrf.mxu0  ;;  %2537 = vmatmul.mubr.bf16.vlgmr.msra.gmra.mxu1 %v2361_v59 }
 0x775   : > { %v2323_v7 = vadd.f32 %v2322_v50, %v2189_v38  ;;  %v2351_v16 = vmax.f32 %v2321_v33, 0.0 }
 0x776   : > { %v2326_v62 = vpop.f32.mrf.mxu0 }
 0x777   : > { %v2352_v19 = vmax.f32 %v2323_v7, 0.0  ;;  %v2363_v32 = vpack.c.bf16 %v2351_v16, %v2349_v40  ;;  %v2327_v24 = vadd.f32 %v2326_v62, %v2185_v3 }
 0x778   : > { %v2328_v4 = vpop.f32.mrf.mxu0 }
 0x779   : > { %v2364_v28 = vpack.c.bf16 %v2352_v19, %v2350_v52  ;;  %v2329_v35 = vadd.f32 %v2328_v4, %v2189_v38  ;;  %v2353_v6 = vmax.f32 %v2327_v24, 0.0 }
 0x77a   : > { %v2330_v5 = vpop.f32.mrf.mxu0 }
 0x77b   : > { %v2331_v0 = vadd.f32 %v2330_v5, %v2185_v3  ;;  %2544 = vmatprep.mubr.bf16.mxu1 %v2364_v28  ;;  %v2354_v2 = vmax.f32 %v2329_v35, 0.0 }
 0x77c   : > { %v2332_v14 = vpop.f32.mrf.mxu0  ;;  %2545 = vmatmul.mubr.bf16.gmra.mxu1 %v2363_v32 }
 0x77d   : > { %v2333_v53 = vadd.f32 %v2332_v14, %v2189_v38  ;;  %v2355_v30 = vmax.f32 %v2331_v0, 0.0 }
 0x77e   : > { %v2336_v10 = vpop.f32.mrf.mxu0 }
 0x77f   : > { %v2356_v54 = vmax.f32 %v2333_v53, 0.0  ;;  %v2365_v58 = vpack.c.bf16 %v2355_v30, %v2353_v6  ;;  %v2337_v23 = vadd.f32 %v2336_v10, %v2185_v3 }
 0x780   : > { %v2338_v57 = vpop.f32.mrf.mxu0 }
 0x781   : > { %v2366_v37 = vpack.c.bf16 %v2356_v54, %v2354_v2  ;;  %v2339_v55 = vadd.f32 %v2338_v57, %v2189_v38  ;;  %v2357_v34 = vmax.f32 %v2337_v23, 0.0 }
 0x782   : > { %v2340_v15 = vpop.f32.mrf.mxu0 }
 0x783   : > { %v2341_v22 = vadd.f32 %v2340_v15, %v2185_v3  ;;  %2552 = vmatprep.mubr.bf16.mxu1 %v2366_v37  ;;  %v2358_v27 = vmax.f32 %v2339_v55, 0.0 }
 0x784   : > { %v2342_v25 = vpop.f32.mrf.mxu0  ;;  %2553 = vmatmul.mubr.bf16.gmra.mxu1 %v2365_v58 }
 0x785   : > { %v2343_v13 = vadd.f32 %v2342_v25, %v2189_v38  ;;  %v2359_v20 = vmax.f32 %v2341_v22, 0.0 }
 0x787   : > { %v2360_v51 = vmax.f32 %v2343_v13, 0.0  ;;  %v2367_v1 = vpack.c.bf16 %v2359_v20, %v2357_v34 }
 0x789   : > { %v2368_v21 = vpack.c.bf16 %v2360_v51, %v2358_v27 }
 0x78b   : > { %2560 = vmatprep.mubr.bf16.mxu1 %v2368_v21 }
 0x78c   : > { %2561 = vmatmul.mubr.bf16.gmra.mxu1 %v2367_v1 }
 0x834   : > { %v3209_v36 = vpop.f32.mrf.mxu1 }
 0x836   : > { %v3210_v46 = vpop.f32.mrf.mxu1 }
 0x837   : > { %v3211_v61 = vadd.f32 %v3210_v46, %v3209_v36 }
 0x838   : > { %v3212_v60 = vpop.f32.mrf.mxu1 }
 0x839   : > { %v2539_v8 = vadd.f32 %v3211_v61, %v3047_v11 }
 0x83a   : > { %v3213_v9 = vpop.f32.mrf.mxu1 }
 0x83b   : > { %v3214_v3 = vadd.f32 %v3213_v9, %v3212_v60  ;;  %v2569_v12 = vadd.f32 %v2539_v8, %v5290_v31 }
 0x83c   : > { %v3215_v38 = vpop.f32.mrf.mxu1 }
 0x83d   : > { %v2542_v48 = vadd.f32 %v3214_v3, %v3047_v11  ;;  %2579 = vadd.xlane.f32.xlu0 %v2569_v12 }
 0x83e   : > { %v3216_v44 = vpop.f32.mrf.mxu1 }
 0x83f   : > { %v3217_v29 = vadd.f32 %v3216_v44, %v3215_v38  ;;  %v2570_v39 = vadd.f32 %v2542_v48, %v5292_v17 }
 0x840   : > { %v3218_v45 = vpop.f32.mrf.mxu1 }
 0x841   : > { %v2547_v59 = vadd.f32 %v3217_v29, %v3047_v11  ;;  %2581 = vadd.xlane.f32.xlu1 %v2570_v39 }
 0x842   : > { %v3219_v18 = vpop.f32.mrf.mxu1 }
 0x843   : > { %v3220_v26 = vadd.f32 %v3219_v18, %v3218_v45  ;;  %v2571_v33 = vadd.f32 %v2547_v59, %v5302_v43 }
 0x844   : > { %v3221_v41 = vpop.f32.mrf.mxu1 }
 0x845   : > { %v2550_v50 = vadd.f32 %v3220_v26, %v3047_v11  ;;  %2583 = vadd.xlane.f32.xlu0 %v2571_v33 }
 0x846   : > { %v3222_v7 = vpop.f32.mrf.mxu1 }
 0x847   : > { %v3223_v16 = vadd.f32 %v3222_v7, %v3221_v41  ;;  %v2572_v31 = vadd.f32 %v2550_v50, %v5299_v63 }
 0x848   : > { %v3224_v62 = vpop.f32.mrf.mxu1 }
 0x849   : > { %v2555_v52 = vadd.f32 %v3223_v16, %v3047_v11  ;;  %2585 = vadd.xlane.f32.xlu1 %v2572_v31 }
 0x84a   : > { %v3225_v19 = vpop.f32.mrf.mxu1 }
 0x84b   : > { %v3226_v40 = vadd.f32 %v3225_v19, %v3224_v62  ;;  %v2573_v17 = vadd.f32 %v2555_v52, %v5311_v42  ;;  %v3064_v62 = vld [vmem:[%s5541_s24] ss:$0 sm:$0xff] }
 0x84c   : > { %v3227_v4 = vpop.f32.mrf.mxu1 }
 0x84d   : > { %v2558_v28 = vadd.f32 %v3226_v40, %v3047_v11  ;;  %2587 = vadd.xlane.f32.xlu0 %v2573_v17  ;;  %v3065_v40 = vld [vmem:[%s5542_s6] ss:$0 sm:$0xff] }
 0x84e   : > { %v3228_v32 = vpop.f32.mrf.mxu1 }
 0x84f   : > { %v3229_v5 = vadd.f32 %v3228_v32, %v3227_v4  ;;  %v2574_v43 = vadd.f32 %v2558_v28, %v5308_v47 }
 0x850   : > { %v3230_v35 = vpop.f32.mrf.mxu1 }
 0x851   : > { %v2563_v0 = vadd.f32 %v3229_v5, %v3047_v11  ;;  %2589 = vadd.xlane.f32.xlu1 %v2574_v43 }
 0x852   : > { %v3231_v24 = vpop.f32.mrf.mxu1 }
 0x853   : > { %v3232_v14 = vadd.f32 %v3231_v24, %v3230_v35  ;;  %v2575_v63 = vadd.f32 %v2563_v0, %v5319_v49 }
 0x855   : > { %v2566_v53 = vadd.f32 %v3232_v14, %v3047_v11  ;;  %2591 = vadd.xlane.f32.xlu0 %v2575_v63 }
 0x857   : > { %v2576_v30 = vadd.f32 %v2566_v53, %v5317_v56 }
 0x859   : > { %2593 = vadd.xlane.f32.xlu1 %v2576_v30 }
 0x8c6   : > { %v2580_v42 = vpop.xlane.xlu0 %2579 }
 0x8c7   : > { %v2595_v10 = vmul.f32 0.0078125, %v2580_v42 }
 0x8c9   : > { %v2603_v2 = vsub.f32 %v2569_v12, %v2595_v10 }
 0x8ca   : > { %v2582_v54 = vpop.xlane.xlu1 %2581 }
 0x8cb   : > { %v2596_v6 = vmul.f32 0.0078125, %v2582_v54  ;;  %v2611_v57 = vmul.f32 %v2603_v2, %v2603_v2 }
 0x8cd   : > { %v5344_v37 = vsub.f32 %v2570_v39, %v2596_v6  ;;  %2619 = vadd.xlane.f32.xlu0 %v2611_v57 }
 0x8ce   : > { %v2584_v47 = vpop.xlane.xlu0 %2583 }
 0x8cf   : > { %v2597_v58 = vmul.f32 0.0078125, %v2584_v47  ;;  %v2612_v15 = vmul.f32 %v5344_v37, %v5344_v37 }
 0x8d1   : > { %v5348_v49 = vsub.f32 %v2571_v33, %v2597_v58  ;;  %2621 = vadd.xlane.f32.xlu1 %v2612_v15 }
 0x8d2   : > { %v2586_v55 = vpop.xlane.xlu1 %2585 }
 0x8d3   : > { %v2598_v56 = vmul.f32 0.0078125, %v2586_v55  ;;  %v2613_v22 = vmul.f32 %v5348_v49, %v5348_v49 }
 0x8d5   : > { %v5352_v23 = vsub.f32 %v2572_v31, %v2598_v56  ;;  %2623 = vadd.xlane.f32.xlu0 %v2613_v22 }
 0x8d6   : > { %v2588_v25 = vpop.xlane.xlu0 %2587 }
 0x8d7   : > { %v2599_v13 = vmul.f32 0.0078125, %v2588_v25  ;;  %v2614_v20 = vmul.f32 %v5352_v23, %v5352_v23 }
 0x8d9   : > { %v5356_v27 = vsub.f32 %v2573_v17, %v2599_v13  ;;  %2625 = vadd.xlane.f32.xlu1 %v2614_v20 }
 0x8da   : > { %v2590_v51 = vpop.xlane.xlu1 %2589 }
 0x8db   : > { %v2600_v34 = vmul.f32 0.0078125, %v2590_v51  ;;  %v2615_v21 = vmul.f32 %v5356_v27, %v5356_v27 }
 0x8dd   : > { %v5360_v1 = vsub.f32 %v2574_v43, %v2600_v34  ;;  %2627 = vadd.xlane.f32.xlu0 %v2615_v21 }
 0x8de   : > { %v2592_v36 = vpop.xlane.xlu0 %2591 }
 0x8df   : > { %v2601_v11 = vmul.f32 0.0078125, %v2592_v36  ;;  %v2616_v46 = vmul.f32 %v5360_v1, %v5360_v1 }
 0x8e1   : > { %v5364_v61 = vsub.f32 %v2575_v63, %v2601_v11  ;;  %2629 = vadd.xlane.f32.xlu1 %v2616_v46 }
 0x8e2   : > { %v2594_v60 = vpop.xlane.xlu1 %2593 }
 0x8e3   : > { %v2602_v8 = vmul.f32 0.0078125, %v2594_v60  ;;  %v2617_v9 = vmul.f32 %v5364_v61, %v5364_v61 }
 0x8e5   : > { %v5368_v3 = vsub.f32 %v2576_v30, %v2602_v8  ;;  %2631 = vadd.xlane.f32.xlu0 %v2617_v9 }
 0x8e7   : > { %v2618_v12 = vmul.f32 %v5368_v3, %v5368_v3 }
 0x8e9   : > { %2633 = vadd.xlane.f32.xlu1 %v2618_v12 }
 0x956   : > { %v2620_v38 = vpop.xlane.xlu0 %2619 }
 0x957   : > { %v2635_v48 = vmul.f32 0.0078125, %v2620_v38 }
 0x959   : > { %v2643_v44 = vadd.f32 1e-05, %v2635_v48 }
 0x95a   : > { %v2622_v29 = vpop.xlane.xlu1 %2621 }
 0x95b   : > { %3716 = vrsqrt.f32 %v2643_v44  ;;  %v2636_v39 = vmul.f32 0.0078125, %v2622_v29 }
 0x95d   : > { %v2644_v45 = vadd.f32 1e-05, %v2636_v39 }
 0x95e   : > { %v2624_v59 = vpop.xlane.xlu0 %2623 }
 0x95f   : > { %3718 = vrsqrt.f32 %v2644_v45  ;;  %v2637_v18 = vmul.f32 0.0078125, %v2624_v59 }
 0x961   : > { %v2645_v26 = vadd.f32 1e-05, %v2637_v18 }
 0x962   : > { %v2626_v33 = vpop.xlane.xlu1 %2625 }
 0x963   : > { %3720 = vrsqrt.f32 %v2645_v26  ;;  %v2638_v41 = vmul.f32 0.0078125, %v2626_v33 }
 0x965   : > { %v2646_v50 = vadd.f32 1e-05, %v2638_v41 }
 0x966   : > { %v2628_v7 = vpop.xlane.xlu0 %2627 }
 0x967   : > { %3722 = vrsqrt.f32 %v2646_v50  ;;  %v2639_v16 = vmul.f32 0.0078125, %v2628_v7 }
 0x968   : > { %v3717_v31 = vpop.eup %3716 }
 0x969   : > { %v2659_v52 = vmul.f32 %v3717_v31, %v2603_v2  ;;  %v2647_v19 = vadd.f32 1e-05, %v2639_v16 }
 0x96a   : > { %v2630_v17 = vpop.xlane.xlu1 %2629 }
 0x96b   : > { %v2673_v4 = vmul.f32 %v3064_v62, %v2659_v52  ;;  %3724 = vrsqrt.f32 %v2647_v19  ;;  %v2640_v28 = vmul.f32 0.0078125, %v2630_v17 }
 0x96c   : > { %v3719_v32 = vpop.eup %3718 }
 0x96d   : > { %v2687_v5 = vadd.f32 %v3065_v40, %v2673_v4  ;;  %v2660_v43 = vmul.f32 %v3719_v32, %v5344_v37  ;;  %v2648_v35 = vadd.f32 1e-05, %v2640_v28 }
 0x96e   : > { %v2632_v0 = vpop.xlane.xlu0 %2631 }
 0x96f   : > { %2695 = vst [vmem:[%s5505_s30] sm:$0xff] %v2687_v5  ;;  %v2674_v24 = vmul.f32 %v3064_v62, %v2660_v43  ;;  %3726 = vrsqrt.f32 %v2648_v35  ;;  %v2641_v14 = vmul.f32 0.0078125, %v2632_v0 }
 0x970   : > { %v3721_v63 = vpop.eup %3720 }
 0x971   : > { %v2688_v53 = vadd.f32 %v3065_v40, %v2674_v24  ;;  %v2661_v30 = vmul.f32 %v3721_v63, %v5348_v49  ;;  %v2649_v42 = vadd.f32 1e-05, %v2641_v14 }
 0x972   : > { %v2634_v10 = vpop.xlane.xlu1 %2633 }
 0x973   : > { %2696 = vst [vmem:[%s5505_s30 + $0x8] sm:$0xff] %v2688_v53  ;;  %v2675_v2 = vmul.f32 %v3064_v62, %v2661_v30  ;;  %3728 = vrsqrt.f32 %v2649_v42  ;;  %v2642_v54 = vmul.f32 0.0078125, %v2634_v10 }
 0x974   : > { %v3723_v6 = vpop.eup %3722 }
 0x975   : > { %v2689_v57 = vadd.f32 %v3065_v40, %v2675_v2  ;;  %v2662_v37 = vmul.f32 %v3723_v6, %v5352_v23  ;;  %v2650_v47 = vadd.f32 1e-05, %v2642_v54 }
 0x977   : > { %2697 = vst [vmem:[%s5505_s30 + $0x10] sm:$0xff] %v2689_v57  ;;  %v2676_v58 = vmul.f32 %v3064_v62, %v2662_v37  ;;  %3730 = vrsqrt.f32 %v2650_v47 }
 0x978   : > { %v3725_v15 = vpop.eup %3724 }
 0x979   : > { %v2690_v49 = vadd.f32 %v3065_v40, %v2676_v58  ;;  %v2663_v55 = vmul.f32 %v3725_v15, %v5356_v27 }
 0x97b   : > { %2698 = vst [vmem:[%s5505_s30 + $0x18] sm:$0xff] %v2690_v49  ;;  %v2677_v56 = vmul.f32 %v3064_v62, %v2663_v55 }
 0x97c   : > { %v3727_v22 = vpop.eup %3726 }
 0x97d   : > { %v2691_v25 = vadd.f32 %v3065_v40, %v2677_v56  ;;  %v2664_v23 = vmul.f32 %v3727_v22, %v5360_v1 }
 0x97f   : > { %2699 = vst [vmem:[%s5505_s30 + $0x20] sm:$0xff] %v2691_v25  ;;  %v2678_v13 = vmul.f32 %v3064_v62, %v2664_v23 }
 0x980   : > { %v3729_v20 = vpop.eup %3728 }
 0x981   : > { %v2692_v51 = vadd.f32 %v3065_v40, %v2678_v13  ;;  %v2665_v34 = vmul.f32 %v3729_v20, %v5364_v61 }
 0x983   : > { %2700 = vst [vmem:[%s5505_s30 + $0x28] sm:$0xff] %v2692_v51  ;;  %v2679_v27 = vmul.f32 %v3064_v62, %v2665_v34 }
 0x984   : > { %v3731_v21 = vpop.eup %3730 }
 0x985   : > { %v2693_v36 = vadd.f32 %v3065_v40, %v2679_v27  ;;  %v2666_v11 = vmul.f32 %v3731_v21, %v5368_v3 }
 0x987   : > { %2701 = vst [vmem:[%s5505_s30 + $0x30] sm:$0xff] %v2693_v36  ;;  %v2680_v1 = vmul.f32 %v3064_v62, %v2666_v11 }
 0x989   : > { %v2694_v46 = vadd.f32 %v3065_v40, %v2680_v1 }
 0x98b   : > { %2702 = vst [vmem:[%s5505_s30 + $0x38] sm:$0xff] %v2694_v46 }
 0x98c PF: > { %s5543_s22 = sld [smem:[#allocation23_spill]]  ;;  %s5548_s16 = smov %s4026_s17 }
 0x98d   : > { %s5544_s29 = sld [smem:[#allocation20_spill]] }
 0x98e   : > { %s5545_s30 = sld [smem:[#allocation21_spill]] }
 0x98f   : > { %s5546_s15 = sld [smem:[#allocation26_spill]] }
 0x990   : > { %s5547_s8 = sld [smem:[#allocation24_spill]] }
 0x992   : > { %s39_s18 = sadd.s32 1, %s5543_s22  }
 0x993   : > { %p36_p10 = scmp.ge.s32.totalorder %s39_s18, 6  }
 0x995   :  { %38 = sbr.rel (!%p36_p10) target bundleno = 23 (0x17), region = 220 }
 0x996   : > { %s5549_s17 = smov %s5547_s8 }
 0x99a   :  { %2725 = vsyncpa [#allocation3], 1 }
 0x99b   :  { %2727 = vsyncpa [#allocation3 + $0x1], 1 }
 0x99c   :  { %2728 = vsyncpa [#allocation5], 1 }
 0x99d   :  { %2730 = vsyncpa [#allocation5 + $0x1], 1 }
 0x99e   :  { %2731 = vsyncpa [#allocation8], 1 }
 0x99f   :  { %2733 = vsyncpa [#allocation8 + $0x1], 1 }
 0x9a0   :  { %2734 = vsyncpa [#allocation11], 1 }
 0x9a1   :  { %2736 = vsyncpa [#allocation11 + $0x1], 1 }
 0x9a2   :  { %2737 = vsyncpa [#allocation14], 1 }
 0x9a3   :  { %2739 = vsyncpa [#allocation14 + $0x1], 1 }

</bundles_post_ra>
